<compile_context>
chip_gen: v5e
topology: v5e:2x2
jax: 0.10.0
libtpu: 0.0.40
codegen_flags: <defaults>
</compile_context>

<pallas_src>
import jax
import jax.numpy as jnp
import numpy as np
from jax.experimental import pallas as pl
from jax.experimental.pallas import tpu as pltpu

CONFIG = dict(
    num_nodes=8,      # N
    node_dim=2,       # 2-D coordinates
    voc_nodes_in=2,
    voc_edges_in=3,   # edge-type vocabulary (concatenated with 1 distance feature)
    voc_edges_out=2,
    hidden_dim=32,    # H
    num_layers=2,     # GCN layers
    mlp_layers=2,     # hidden layers of the edge MLP head
)


# ----------------------------------------------------------------------------
# Pallas kernel: embeddings -> num_layers residual gated GCN layers -> edge MLP
# ----------------------------------------------------------------------------
def tsp_kernel(nf_ref, ef_ref, pc_ref, sj_ref,
               wne_ref, wee_ref,
               weu_ref, beu_ref, wnf_ref, bnf_ref,
               wmh_ref, bmh_ref, wmo_ref, bmo_ref, out_ref):
    f32 = jnp.float32
    BN = nf_ref.shape[0]          # B * N   (node rows, batch folded in)
    H = wne_ref.shape[1]

    # Constant scatter matrices, built wrapper-side (trace time) and DMA'd in.
    proj_comb = pc_ref[...]       # (B*N*N, 2*B*N) = [proj_i + proj_j | proj_j]
    sum_j = sj_ref[...]           # (B*N,   B*N*N)   segment-sum over j

    # --- node / edge embeddings (Linear, no bias); batch folded into M -------
    x = jnp.dot(nf_ref[...], wne_ref[...], preferred_element_type=f32)   # (B*N, H)
    e = jnp.dot(ef_ref[...], wee_ref[...], preferred_element_type=f32)   # (B*N*N, H)

    zeros_h = jnp.zeros((BN, H), f32)   # hoisted: reused every layer

    # --- residual gated GCN layers (TSPConv) ---------------------------------
    num_layers = weu_ref.shape[0]
    for layer in range(num_layers):
        # edge-side projection
        Ue = jnp.dot(e, weu_ref[layer], preferred_element_type=f32) + beu_ref[layer]

        # fused node-side projections: [Vx | Ux | Vx2] in a single matmul
        xp = jnp.dot(x, wnf_ref[layer], preferred_element_type=f32) + bnf_ref[layer]
        Vx = xp[:, :H]
        Ux = xp[:, H:2 * H]
        Vx2 = xp[:, 2 * H:]

        # single fused scatter matmul:
        #   [proj_i+proj_j | proj_j] @ [[Vx,0],[0,Vx2]] = [Vx_i+Vx_j | Vx2_j]
        rhs = jnp.concatenate(
            [jnp.concatenate([Vx, zeros_h], axis=-1),
             jnp.concatenate([zeros_h, Vx2], axis=-1)], axis=0)       # (2*B*N, 2H)
        bc = jnp.dot(proj_comb, rhs, preferred_element_type=f32)      # (B*N*N, 2H)

        # edge update: e_ij <- U e_ij + V x_i + V x_j
        e_tmp = Ue + bc[:, :H]
        gate = jax.nn.sigmoid(e_tmp)
        vj2 = bc[:, H:]                                               # V x_j (node side)

        # node update: x_i <- U x_i + sum_j gate_ij * V x_j / sum_j gate_ij
        # (numerator and denominator fused into one 64-lane segment-sum matmul)
        cat = jnp.concatenate([gate * vj2, gate], axis=-1)            # (B*N*N, 2H)
        tmp = jnp.dot(sum_j, cat, preferred_element_type=f32)         # (B*N,   2H)
        agg = tmp[:, :H] / (1e-20 + tmp[:, H:])

        # TODO(synk): TSPConv source not provided; its BatchNorm (if any) is
        # treated as identity (eval mode, unit running stats).
        x = x + jax.nn.relu(Ux + agg)
        e = e + jax.nn.relu(e_tmp)

    # --- edge classification MLP ---------------------------------------------
    y = e
    for layer in range(wmh_ref.shape[0]):
        y = jax.nn.relu(
            jnp.dot(y, wmh_ref[layer], preferred_element_type=f32) + bmh_ref[layer])
    y = jnp.dot(y, wmo_ref[...], preferred_element_type=f32) + bmo_ref[...]  # (B*N*N, Eout)

    # store as-is; the (B, N, N, Eout) reshape happens outside the kernel
    out_ref[...] = y.astype(out_ref.dtype)


# ----------------------------------------------------------------------------
# Constant scatter matrices (trace-time numpy; B, N are static)
# ----------------------------------------------------------------------------
def build_scatter_mats(B, N):
    BN, BNN = B * N, B * N * N
    q = np.arange(BNN)
    p = np.arange(BN)
    i_row = q // N                            # node row of endpoint i  (b*N + i)
    j_row = (q // (N * N)) * N + (q % N)      # node row of endpoint j  (b*N + j)
    proj_i = (p[None, :] == i_row[:, None]).astype(np.float32)   # (BNN, BN)
    proj_j = (p[None, :] == j_row[:, None]).astype(np.float32)   # (BNN, BN)
    proj_comb = np.concatenate([proj_i + proj_j, proj_j], axis=1)  # (BNN, 2*BN)
    sum_j = (p[:, None] == i_row[None, :]).astype(np.float32)      # (BN, BNN)
    return jnp.asarray(proj_comb), jnp.asarray(sum_j)


# ----------------------------------------------------------------------------
# Wrapper
# ----------------------------------------------------------------------------
def tsp_forward(n_feat, e_feat, params, cfg):
    B, N, node_dim = n_feat.shape
    Ein = e_feat.shape[-1]
    Eout = cfg["voc_edges_out"]

    # fold the batch into the matmul M dimension (wrapper-side flatten)
    nf2 = n_feat.reshape(B * N, node_dim)
    ef2 = e_feat.reshape(B * N * N, Ein)

    proj_comb, sum_j = build_scatter_mats(B, N)

    # fuse the three node-side per-layer projections into one (H, 3H) weight
    w_node_fused = jnp.concatenate(
        [params["w_ev"], params["w_nu"], params["w_nv"]], axis=-1)   # (L, H, 3H)
    b_node_fused = jnp.concatenate(
        [params["b_ev"], params["b_nu"], params["b_nv"]], axis=-1)   # (L, 1, 3H)

    args = [
        nf2, ef2, proj_comb, sum_j,
        params["w_node_emb"], params["w_edge_emb"],
        params["w_eu"], params["b_eu"],
        w_node_fused, b_node_fused,
        params["w_mlp_h"], params["b_mlp_h"],
        params["w_mlp_o"], params["b_mlp_o"],
    ]

    def full_spec(a):
        nd = a.ndim
        return pl.BlockSpec(a.shape, lambda b, _nd=nd: (0,) * _nd)

    in_specs = [full_spec(a) for a in args]

    out2d = pl.pallas_call(
        tsp_kernel,
        out_shape=jax.ShapeDtypeStruct((B * N * N, Eout), jnp.float32),
        grid=(1,),   # whole (small) batch in one step; weights stay resident
        in_specs=in_specs,
        out_specs=pl.BlockSpec((B * N * N, Eout), lambda b: (0, 0)),
        compiler_params=pltpu.CompilerParams(dimension_semantics=("arbitrary",)),
    )(*args)

    return out2d.reshape(B, N, N, Eout)


# ----------------------------------------------------------------------------
# Deterministic parameter init (synthetic, matches the module's shapes)
# ----------------------------------------------------------------------------
def init_params(key, cfg):
    H = cfg["hidden_dim"]
    nd = cfg["node_dim"]
    Ein = 1 + cfg["voc_edges_in"]
    L = cfg["num_layers"]
    Lm = cfg["mlp_layers"]
    Eout = cfg["voc_edges_out"]
    keys = jax.random.split(key, 16)
    s = 0.1
    p = {}
    p["w_node_emb"] = s * jax.random.normal(keys[0], (nd, H), jnp.float32)
    p["w_edge_emb"] = s * jax.random.normal(keys[1], (Ein, H), jnp.float32)
    p["w_eu"] = s * jax.random.normal(keys[2], (L, H, H), jnp.float32)
    p["b_eu"] = s * jax.random.normal(keys[3], (L, 1, H), jnp.float32)
    p["w_ev"] = s * jax.random.normal(keys[4], (L, H, H), jnp.float32)
    p["b_ev"] = s * jax.random.normal(keys[5], (L, 1, H), jnp.float32)
    p["w_nu"] = s * jax.random.normal(keys[6], (L, H, H), jnp.float32)
    p["b_nu"] = s * jax.random.normal(keys[7], (L, 1, H), jnp.float32)
    p["w_nv"] = s * jax.random.normal(keys[8], (L, H, H), jnp.float32)
    p["b_nv"] = s * jax.random.normal(keys[9], (L, 1, H), jnp.float32)
    p["w_mlp_h"] = s * jax.random.normal(keys[10], (Lm, H, H), jnp.float32)
    p["b_mlp_h"] = s * jax.random.normal(keys[11], (Lm, 1, H), jnp.float32)
    p["w_mlp_o"] = s * jax.random.normal(keys[12], (H, Eout), jnp.float32)
    p["b_mlp_o"] = s * jax.random.normal(keys[13], (1, Eout), jnp.float32)
    return p


# ----------------------------------------------------------------------------
# Pure-JAX reference (same math, for correctness check)
# ----------------------------------------------------------------------------
def ref_forward(n_feat, e_feat, p):
    x = n_feat @ p["w_node_emb"]                 # (B, N, H)
    e = e_feat @ p["w_edge_emb"]                 # (B, N, N, H)
    for l in range(p["w_eu"].shape[0]):
        Ue = e @ p["w_eu"][l] + p["b_eu"][l]
        Vx = x @ p["w_ev"][l] + p["b_ev"][l]
        e_tmp = Ue + Vx[:, :, None, :] + Vx[:, None, :, :]
        gate = jax.nn.sigmoid(e_tmp)
        Ux = x @ p["w_nu"][l] + p["b_nu"][l]
        Vx2 = x @ p["w_nv"][l] + p["b_nv"][l]
        agg = jnp.sum(gate * Vx2[:, None, :, :], axis=2) / (
            1e-20 + jnp.sum(gate, axis=2))
        x = x + jax.nn.relu(Ux + agg)
        e = e + jax.nn.relu(e_tmp)
    y = e
    for l in range(p["w_mlp_h"].shape[0]):
        y = jax.nn.relu(y @ p["w_mlp_h"][l] + p["b_mlp_h"][l])
    return y @ p["w_mlp_o"] + p["b_mlp_o"]


if __name__ == "__main__":
    cfg = CONFIG
    B, N = 2, cfg["num_nodes"]
    key = jax.random.PRNGKey(0)
    k_param, k_nodes, k_edges = jax.random.split(key, 3)

    params = init_params(k_param, cfg)
    n_feat = jax.random.uniform(k_nodes, (B, N, cfg["node_dim"]), jnp.float32)
    e_feat = jax.random.normal(k_edges, (B, N, N, 1 + cfg["voc_edges_in"]), jnp.float32)

    y_pred = tsp_forward(n_feat, e_feat, params, cfg)
    y_pred = jax.block_until_ready(y_pred)

    y_ref = jax.block_until_ready(ref_forward(n_feat, e_feat, params))
    assert y_pred.shape == (B, N, N, cfg["voc_edges_out"])
    np.testing.assert_allclose(np.asarray(y_pred), np.asarray(y_ref),
                               rtol=1e-4, atol=1e-4)

    print("KERNEL_OK")
</pallas_src>

<mosaic_0001>
module attributes {stable_mosaic.version = 11 : i64} {
  func.func @tsp_kernel(%arg0: i32, %arg1: memref<16x2xf32, #tpu.memory_space<vmem>>, %arg2: memref<128x4xf32, #tpu.memory_space<vmem>>, %arg3: memref<128x32xf32, #tpu.memory_space<vmem>>, %arg4: memref<16x128xf32, #tpu.memory_space<vmem>>, %arg5: memref<2x32xf32, #tpu.memory_space<vmem>>, %arg6: memref<4x32xf32, #tpu.memory_space<vmem>>, %arg7: memref<2x32x32xf32, #tpu.memory_space<vmem>>, %arg8: memref<2x1x32xf32, #tpu.memory_space<vmem>>, %arg9: memref<2x32x96xf32, #tpu.memory_space<vmem>>, %arg10: memref<2x1x96xf32, #tpu.memory_space<vmem>>, %arg11: memref<2x32x32xf32, #tpu.memory_space<vmem>>, %arg12: memref<2x1x32xf32, #tpu.memory_space<vmem>>, %arg13: memref<32x2xf32, #tpu.memory_space<vmem>>, %arg14: memref<1x2xf32, #tpu.memory_space<vmem>>, %arg15: memref<128x2xf32, #tpu.memory_space<vmem>>) attributes {dimension_semantics = [#tpu.dimension_semantics<arbitrary>], iteration_bounds = array<i64: 1>, scalar_prefetch = 0 : i64, scratch_operands = 0 : i64, tpu.core_type = #tpu.core_type<tc>, window_params = [{pipeline_mode = #tpu.pipeline_mode<synchronous>, transform_indices = @transform_0, window_bounds = array<i64: 16, 2>}, {pipeline_mode = #tpu.pipeline_mode<synchronous>, transform_indices = @transform_1, window_bounds = array<i64: 128, 4>}, {pipeline_mode = #tpu.pipeline_mode<synchronous>, transform_indices = @transform_2, window_bounds = array<i64: 128, 32>}, {pipeline_mode = #tpu.pipeline_mode<synchronous>, transform_indices = @transform_3, window_bounds = array<i64: 16, 128>}, {pipeline_mode = #tpu.pipeline_mode<synchronous>, transform_indices = @transform_4, window_bounds = array<i64: 2, 32>}, {pipeline_mode = #tpu.pipeline_mode<synchronous>, transform_indices = @transform_5, window_bounds = array<i64: 4, 32>}, {pipeline_mode = #tpu.pipeline_mode<synchronous>, transform_indices = @transform_6, window_bounds = array<i64: 2, 32, 32>}, {pipeline_mode = #tpu.pipeline_mode<synchronous>, transform_indices = @transform_7, window_bounds = array<i64: 2, 1, 32>}, {pipeline_mode = #tpu.pipeline_mode<synchronous>, transform_indices = @transform_8, window_bounds = array<i64: 2, 32, 96>}, {pipeline_mode = #tpu.pipeline_mode<synchronous>, transform_indices = @transform_9, window_bounds = array<i64: 2, 1, 96>}, {pipeline_mode = #tpu.pipeline_mode<synchronous>, transform_indices = @transform_10, window_bounds = array<i64: 2, 32, 32>}, {pipeline_mode = #tpu.pipeline_mode<synchronous>, transform_indices = @transform_11, window_bounds = array<i64: 2, 1, 32>}, {pipeline_mode = #tpu.pipeline_mode<synchronous>, transform_indices = @transform_12, window_bounds = array<i64: 32, 2>}, {pipeline_mode = #tpu.pipeline_mode<synchronous>, transform_indices = @transform_13, window_bounds = array<i64: 1, 2>}, {pipeline_mode = #tpu.pipeline_mode<synchronous>, transform_indices = @transform_14, window_bounds = array<i64: 128, 2>}]} {
    %c0 = arith.constant 0 : index
    %c0_0 = arith.constant 0 : index
    %0 = vector.load %arg3[%c0, %c0_0] : memref<128x32xf32, #tpu.memory_space<vmem>>, vector<128x32xf32>
    %c0_1 = arith.constant 0 : index
    %c0_2 = arith.constant 0 : index
    %1 = vector.load %arg4[%c0_1, %c0_2] : memref<16x128xf32, #tpu.memory_space<vmem>>, vector<16x128xf32>
    %c0_3 = arith.constant 0 : index
    %c0_4 = arith.constant 0 : index
    %2 = vector.load %arg1[%c0_3, %c0_4] : memref<16x2xf32, #tpu.memory_space<vmem>>, vector<16x2xf32>
    %c0_5 = arith.constant 0 : index
    %c0_6 = arith.constant 0 : index
    %3 = vector.load %arg5[%c0_5, %c0_6] : memref<2x32xf32, #tpu.memory_space<vmem>>, vector<2x32xf32>
    %cst = arith.constant dense<0.000000e+00> : vector<16x32xf32>
    %4 = tpu.matmul %2, %3, %cst {dimension_numbers = #tpu.dot_dimension_numbers<[1], [0], [0], [1], [0, 0, 1, 1], [], []>} : vector<16x2xf32>, vector<2x32xf32>, vector<16x32xf32> -> vector<16x32xf32>
    %c0_7 = arith.constant 0 : index
    %c0_8 = arith.constant 0 : index
    %5 = vector.load %arg2[%c0_7, %c0_8] : memref<128x4xf32, #tpu.memory_space<vmem>>, vector<128x4xf32>
    %c0_9 = arith.constant 0 : index
    %c0_10 = arith.constant 0 : index
    %6 = vector.load %arg6[%c0_9, %c0_10] : memref<4x32xf32, #tpu.memory_space<vmem>>, vector<4x32xf32>
    %cst_11 = arith.constant dense<0.000000e+00> : vector<128x32xf32>
    %7 = tpu.matmul %5, %6, %cst_11 {dimension_numbers = #tpu.dot_dimension_numbers<[1], [0], [0], [1], [0, 0, 1, 1], [], []>} : vector<128x4xf32>, vector<4x32xf32>, vector<128x32xf32> -> vector<128x32xf32>
    %cst_12 = arith.constant 0.000000e+00 : f32
    %8 = vector.broadcast %cst_12 : f32 to vector<16x32xf32>
    %c0_13 = arith.constant 0 : index
    %c0_14 = arith.constant 0 : index
    %c0_15 = arith.constant 0 : index
    %9 = vector.load %arg7[%c0_13, %c0_14, %c0_15] : memref<2x32x32xf32, #tpu.memory_space<vmem>>, vector<1x32x32xf32>
    %10 = vector.shape_cast %9 : vector<1x32x32xf32> to vector<32x32xf32>
    %cst_16 = arith.constant dense<0.000000e+00> : vector<128x32xf32>
    %11 = tpu.matmul %7, %10, %cst_16 {dimension_numbers = #tpu.dot_dimension_numbers<[1], [0], [0], [1], [0, 0, 1, 1], [], []>} : vector<128x32xf32>, vector<32x32xf32>, vector<128x32xf32> -> vector<128x32xf32>
    %c0_17 = arith.constant 0 : index
    %c0_18 = arith.constant 0 : index
    %c0_19 = arith.constant 0 : index
    %12 = vector.load %arg8[%c0_17, %c0_18, %c0_19] : memref<2x1x32xf32, #tpu.memory_space<vmem>>, vector<1x1x32xf32>
    %13 = vector.shape_cast %12 : vector<1x1x32xf32> to vector<1x32xf32>
    %14 = vector.broadcast %13 : vector<1x32xf32> to vector<128x32xf32>
    %15 = arith.addf %11, %14 : vector<128x32xf32>
    %c0_20 = arith.constant 0 : index
    %c0_21 = arith.constant 0 : index
    %c0_22 = arith.constant 0 : index
    %16 = vector.load %arg9[%c0_20, %c0_21, %c0_22] : memref<2x32x96xf32, #tpu.memory_space<vmem>>, vector<1x32x96xf32>
    %17 = vector.shape_cast %16 : vector<1x32x96xf32> to vector<32x96xf32>
    %cst_23 = arith.constant dense<0.000000e+00> : vector<16x96xf32>
    %18 = tpu.matmul %4, %17, %cst_23 {dimension_numbers = #tpu.dot_dimension_numbers<[1], [0], [0], [1], [0, 0, 1, 1], [], []>} : vector<16x32xf32>, vector<32x96xf32>, vector<16x96xf32> -> vector<16x96xf32>
    %c0_24 = arith.constant 0 : index
    %c0_25 = arith.constant 0 : index
    %c0_26 = arith.constant 0 : index
    %19 = vector.load %arg10[%c0_24, %c0_25, %c0_26] : memref<2x1x96xf32, #tpu.memory_space<vmem>>, vector<1x1x96xf32>
    %20 = vector.shape_cast %19 : vector<1x1x96xf32> to vector<1x96xf32>
    %21 = vector.broadcast %20 : vector<1x96xf32> to vector<16x96xf32>
    %22 = arith.addf %18, %21 : vector<16x96xf32>
    %23 = vector.extract_strided_slice %22 {offsets = [0, 0], sizes = [16, 32], strides = [1, 1]} : vector<16x96xf32> to vector<16x32xf32>
    %24 = vector.extract_strided_slice %22 {offsets = [0, 32], sizes = [16, 32], strides = [1, 1]} : vector<16x96xf32> to vector<16x32xf32>
    %25 = vector.extract_strided_slice %22 {offsets = [0, 64], sizes = [16, 32], strides = [1, 1]} : vector<16x96xf32> to vector<16x32xf32>
    %26 = tpu.concatenate %23, %8 in 1 : vector<16x32xf32>, vector<16x32xf32> -> vector<16x64xf32>
    %27 = tpu.concatenate %8, %25 in 1 : vector<16x32xf32>, vector<16x32xf32> -> vector<16x64xf32>
    %28 = tpu.concatenate %26, %27 in 0 : vector<16x64xf32>, vector<16x64xf32> -> vector<32x64xf32>
    %cst_27 = arith.constant dense<0.000000e+00> : vector<128x64xf32>
    %29 = tpu.matmul %0, %28, %cst_27 {dimension_numbers = #tpu.dot_dimension_numbers<[1], [0], [0], [1], [0, 0, 1, 1], [], []>} : vector<128x32xf32>, vector<32x64xf32>, vector<128x64xf32> -> vector<128x64xf32>
    %30 = vector.extract_strided_slice %29 {offsets = [0, 0], sizes = [128, 32], strides = [1, 1]} : vector<128x64xf32> to vector<128x32xf32>
    %31 = arith.addf %15, %30 : vector<128x32xf32>
    %32 = arith.negf %31 : vector<128x32xf32>
    %33 = math.exp %32 : vector<128x32xf32>
    %cst_28 = arith.constant 1.000000e+00 : f32
    %34 = vector.broadcast %cst_28 : f32 to vector<128x32xf32>
    %35 = arith.addf %34, %33 : vector<128x32xf32>
    %36 = arith.divf %34, %35 : vector<128x32xf32>
    %37 = vector.extract_strided_slice %29 {offsets = [0, 32], sizes = [128, 32], strides = [1, 1]} : vector<128x64xf32> to vector<128x32xf32>
    %38 = arith.mulf %36, %37 : vector<128x32xf32>
    %39 = tpu.concatenate %38, %36 in 1 : vector<128x32xf32>, vector<128x32xf32> -> vector<128x64xf32>
    %cst_29 = arith.constant dense<0.000000e+00> : vector<16x64xf32>
    %40 = tpu.matmul %1, %39, %cst_29 {dimension_numbers = #tpu.dot_dimension_numbers<[1], [0], [0], [1], [0, 0, 1, 1], [], []>} : vector<16x128xf32>, vector<128x64xf32>, vector<16x64xf32> -> vector<16x64xf32>
    %41 = vector.extract_strided_slice %40 {offsets = [0, 0], sizes = [16, 32], strides = [1, 1]} : vector<16x64xf32> to vector<16x32xf32>
    %42 = vector.extract_strided_slice %40 {offsets = [0, 32], sizes = [16, 32], strides = [1, 1]} : vector<16x64xf32> to vector<16x32xf32>
    %cst_30 = arith.constant 9.99999968E-21 : f32
    %43 = vector.broadcast %cst_30 : f32 to vector<16x32xf32>
    %44 = arith.addf %43, %42 : vector<16x32xf32>
    %45 = arith.divf %41, %44 : vector<16x32xf32>
    %46 = arith.addf %24, %45 : vector<16x32xf32>
    %cst_31 = arith.constant 0.000000e+00 : f32
    %47 = vector.broadcast %cst_31 : f32 to vector<16x32xf32>
    %48 = arith.maximumf %46, %47 : vector<16x32xf32>
    %49 = arith.addf %4, %48 : vector<16x32xf32>
    %cst_32 = arith.constant 0.000000e+00 : f32
    %50 = vector.broadcast %cst_32 : f32 to vector<128x32xf32>
    %51 = arith.maximumf %31, %50 : vector<128x32xf32>
    %52 = arith.addf %7, %51 : vector<128x32xf32>
    %c1 = arith.constant 1 : index
    %c0_33 = arith.constant 0 : index
    %c0_34 = arith.constant 0 : index
    %53 = vector.load %arg7[%c1, %c0_33, %c0_34] : memref<2x32x32xf32, #tpu.memory_space<vmem>>, vector<1x32x32xf32>
    %54 = vector.shape_cast %53 : vector<1x32x32xf32> to vector<32x32xf32>
    %cst_35 = arith.constant dense<0.000000e+00> : vector<128x32xf32>
    %55 = tpu.matmul %52, %54, %cst_35 {dimension_numbers = #tpu.dot_dimension_numbers<[1], [0], [0], [1], [0, 0, 1, 1], [], []>} : vector<128x32xf32>, vector<32x32xf32>, vector<128x32xf32> -> vector<128x32xf32>
    %c1_36 = arith.constant 1 : index
    %c0_37 = arith.constant 0 : index
    %c0_38 = arith.constant 0 : index
    %56 = vector.load %arg8[%c1_36, %c0_37, %c0_38] : memref<2x1x32xf32, #tpu.memory_space<vmem>>, vector<1x1x32xf32>
    %57 = vector.shape_cast %56 : vector<1x1x32xf32> to vector<1x32xf32>
    %58 = vector.broadcast %57 : vector<1x32xf32> to vector<128x32xf32>
    %59 = arith.addf %55, %58 : vector<128x32xf32>
    %c1_39 = arith.constant 1 : index
    %c0_40 = arith.constant 0 : index
    %c0_41 = arith.constant 0 : index
    %60 = vector.load %arg9[%c1_39, %c0_40, %c0_41] : memref<2x32x96xf32, #tpu.memory_space<vmem>>, vector<1x32x96xf32>
    %61 = vector.shape_cast %60 : vector<1x32x96xf32> to vector<32x96xf32>
    %cst_42 = arith.constant dense<0.000000e+00> : vector<16x96xf32>
    %62 = tpu.matmul %49, %61, %cst_42 {dimension_numbers = #tpu.dot_dimension_numbers<[1], [0], [0], [1], [0, 0, 1, 1], [], []>} : vector<16x32xf32>, vector<32x96xf32>, vector<16x96xf32> -> vector<16x96xf32>
    %c1_43 = arith.constant 1 : index
    %c0_44 = arith.constant 0 : index
    %c0_45 = arith.constant 0 : index
    %63 = vector.load %arg10[%c1_43, %c0_44, %c0_45] : memref<2x1x96xf32, #tpu.memory_space<vmem>>, vector<1x1x96xf32>
    %64 = vector.shape_cast %63 : vector<1x1x96xf32> to vector<1x96xf32>
    %65 = vector.broadcast %64 : vector<1x96xf32> to vector<16x96xf32>
    %66 = arith.addf %62, %65 : vector<16x96xf32>
    %67 = vector.extract_strided_slice %66 {offsets = [0, 0], sizes = [16, 32], strides = [1, 1]} : vector<16x96xf32> to vector<16x32xf32>
    %68 = vector.extract_strided_slice %66 {offsets = [0, 64], sizes = [16, 32], strides = [1, 1]} : vector<16x96xf32> to vector<16x32xf32>
    %69 = tpu.concatenate %67, %8 in 1 : vector<16x32xf32>, vector<16x32xf32> -> vector<16x64xf32>
    %70 = tpu.concatenate %8, %68 in 1 : vector<16x32xf32>, vector<16x32xf32> -> vector<16x64xf32>
    %71 = tpu.concatenate %69, %70 in 0 : vector<16x64xf32>, vector<16x64xf32> -> vector<32x64xf32>
    %cst_46 = arith.constant dense<0.000000e+00> : vector<128x64xf32>
    %72 = tpu.matmul %0, %71, %cst_46 {dimension_numbers = #tpu.dot_dimension_numbers<[1], [0], [0], [1], [0, 0, 1, 1], [], []>} : vector<128x32xf32>, vector<32x64xf32>, vector<128x64xf32> -> vector<128x64xf32>
    %73 = vector.extract_strided_slice %72 {offsets = [0, 0], sizes = [128, 32], strides = [1, 1]} : vector<128x64xf32> to vector<128x32xf32>
    %74 = arith.addf %59, %73 : vector<128x32xf32>
    %cst_47 = arith.constant 0.000000e+00 : f32
    %75 = vector.broadcast %cst_47 : f32 to vector<128x32xf32>
    %76 = arith.maximumf %74, %75 : vector<128x32xf32>
    %77 = arith.addf %52, %76 : vector<128x32xf32>
    %c0_48 = arith.constant 0 : index
    %c0_49 = arith.constant 0 : index
    %c0_50 = arith.constant 0 : index
    %78 = vector.load %arg11[%c0_48, %c0_49, %c0_50] : memref<2x32x32xf32, #tpu.memory_space<vmem>>, vector<1x32x32xf32>
    %79 = vector.shape_cast %78 : vector<1x32x32xf32> to vector<32x32xf32>
    %cst_51 = arith.constant dense<0.000000e+00> : vector<128x32xf32>
    %80 = tpu.matmul %77, %79, %cst_51 {dimension_numbers = #tpu.dot_dimension_numbers<[1], [0], [0], [1], [0, 0, 1, 1], [], []>} : vector<128x32xf32>, vector<32x32xf32>, vector<128x32xf32> -> vector<128x32xf32>
    %c0_52 = arith.constant 0 : index
    %c0_53 = arith.constant 0 : index
    %c0_54 = arith.constant 0 : index
    %81 = vector.load %arg12[%c0_52, %c0_53, %c0_54] : memref<2x1x32xf32, #tpu.memory_space<vmem>>, vector<1x1x32xf32>
    %82 = vector.shape_cast %81 : vector<1x1x32xf32> to vector<1x32xf32>
    %83 = vector.broadcast %82 : vector<1x32xf32> to vector<128x32xf32>
    %84 = arith.addf %80, %83 : vector<128x32xf32>
    %cst_55 = arith.constant 0.000000e+00 : f32
    %85 = vector.broadcast %cst_55 : f32 to vector<128x32xf32>
    %86 = arith.maximumf %84, %85 : vector<128x32xf32>
    %c1_56 = arith.constant 1 : index
    %c0_57 = arith.constant 0 : index
    %c0_58 = arith.constant 0 : index
    %87 = vector.load %arg11[%c1_56, %c0_57, %c0_58] : memref<2x32x32xf32, #tpu.memory_space<vmem>>, vector<1x32x32xf32>
    %88 = vector.shape_cast %87 : vector<1x32x32xf32> to vector<32x32xf32>
    %cst_59 = arith.constant dense<0.000000e+00> : vector<128x32xf32>
    %89 = tpu.matmul %86, %88, %cst_59 {dimension_numbers = #tpu.dot_dimension_numbers<[1], [0], [0], [1], [0, 0, 1, 1], [], []>} : vector<128x32xf32>, vector<32x32xf32>, vector<128x32xf32> -> vector<128x32xf32>
    %c1_60 = arith.constant 1 : index
    %c0_61 = arith.constant 0 : index
    %c0_62 = arith.constant 0 : index
    %90 = vector.load %arg12[%c1_60, %c0_61, %c0_62] : memref<2x1x32xf32, #tpu.memory_space<vmem>>, vector<1x1x32xf32>
    %91 = vector.shape_cast %90 : vector<1x1x32xf32> to vector<1x32xf32>
    %92 = vector.broadcast %91 : vector<1x32xf32> to vector<128x32xf32>
    %93 = arith.addf %89, %92 : vector<128x32xf32>
    %cst_63 = arith.constant 0.000000e+00 : f32
    %94 = vector.broadcast %cst_63 : f32 to vector<128x32xf32>
    %95 = arith.maximumf %93, %94 : vector<128x32xf32>
    %c0_64 = arith.constant 0 : index
    %c0_65 = arith.constant 0 : index
    %96 = vector.load %arg13[%c0_64, %c0_65] : memref<32x2xf32, #tpu.memory_space<vmem>>, vector<32x2xf32>
    %cst_66 = arith.constant dense<0.000000e+00> : vector<128x2xf32>
    %97 = tpu.matmul %95, %96, %cst_66 {dimension_numbers = #tpu.dot_dimension_numbers<[1], [0], [0], [1], [0, 0, 1, 1], [], []>} : vector<128x32xf32>, vector<32x2xf32>, vector<128x2xf32> -> vector<128x2xf32>
    %c0_67 = arith.constant 0 : index
    %c0_68 = arith.constant 0 : index
    %98 = vector.load %arg14[%c0_67, %c0_68] : memref<1x2xf32, #tpu.memory_space<vmem>>, vector<1x2xf32>
    %99 = vector.broadcast %98 : vector<1x2xf32> to vector<128x2xf32>
    %100 = arith.addf %97, %99 : vector<128x2xf32>
    %c0_69 = arith.constant 0 : index
    %c0_70 = arith.constant 0 : index
    %101 = vector.load %arg15[%c0_69, %c0_70] : memref<128x2xf32, #tpu.memory_space<vmem>>, vector<128x2xf32>
    tpu.vector_store %arg15[%c0_69, %c0_70], %100 {strides = array<i32>} : memref<128x2xf32, #tpu.memory_space<vmem>>, vector<128x2xf32>,
    return
  }
  func.func @transform_0(%arg0: i32) -> (i32, i32) {
    %c0_i32 = arith.constant 0 : i32
    %c0_i32_0 = arith.constant 0 : i32
    %c0_i32_1 = arith.constant 0 : i32
    return %c0_i32, %c0_i32_0 : i32, i32
  }
  func.func @transform_1(%arg0: i32) -> (i32, i32) {
    %c0_i32 = arith.constant 0 : i32
    %c0_i32_0 = arith.constant 0 : i32
    %c0_i32_1 = arith.constant 0 : i32
    return %c0_i32, %c0_i32_0 : i32, i32
  }
  func.func @transform_2(%arg0: i32) -> (i32, i32) {
    %c0_i32 = arith.constant 0 : i32
    %c0_i32_0 = arith.constant 0 : i32
    %c0_i32_1 = arith.constant 0 : i32
    return %c0_i32, %c0_i32_0 : i32, i32
  }
  func.func @transform_3(%arg0: i32) -> (i32, i32) {
    %c0_i32 = arith.constant 0 : i32
    %c0_i32_0 = arith.constant 0 : i32
    %c0_i32_1 = arith.constant 0 : i32
    return %c0_i32, %c0_i32_0 : i32, i32
  }
  func.func @transform_4(%arg0: i32) -> (i32, i32) {
    %c0_i32 = arith.constant 0 : i32
    %c0_i32_0 = arith.constant 0 : i32
    %c0_i32_1 = arith.constant 0 : i32
    return %c0_i32, %c0_i32_0 : i32, i32
  }
  func.func @transform_5(%arg0: i32) -> (i32, i32) {
    %c0_i32 = arith.constant 0 : i32
    %c0_i32_0 = arith.constant 0 : i32
    %c0_i32_1 = arith.constant 0 : i32
    return %c0_i32, %c0_i32_0 : i32, i32
  }
  func.func @transform_6(%arg0: i32) -> (i32, i32, i32) {
    %c0_i32 = arith.constant 0 : i32
    %c0_i32_0 = arith.constant 0 : i32
    %c0_i32_1 = arith.constant 0 : i32
    %c0_i32_2 = arith.constant 0 : i32
    return %c0_i32, %c0_i32_0, %c0_i32_1 : i32, i32, i32
  }
  func.func @transform_7(%arg0: i32) -> (i32, i32, i32) {
    %c0_i32 = arith.constant 0 : i32
    %c0_i32_0 = arith.constant 0 : i32
    %c0_i32_1 = arith.constant 0 : i32
    %c0_i32_2 = arith.constant 0 : i32
    return %c0_i32, %c0_i32_0, %c0_i32_1 : i32, i32, i32
  }
  func.func @transform_8(%arg0: i32) -> (i32, i32, i32) {
    %c0_i32 = arith.constant 0 : i32
    %c0_i32_0 = arith.constant 0 : i32
    %c0_i32_1 = arith.constant 0 : i32
    %c0_i32_2 = arith.constant 0 : i32
    return %c0_i32, %c0_i32_0, %c0_i32_1 : i32, i32, i32
  }
  func.func @transform_9(%arg0: i32) -> (i32, i32, i32) {
    %c0_i32 = arith.constant 0 : i32
    %c0_i32_0 = arith.constant 0 : i32
    %c0_i32_1 = arith.constant 0 : i32
    %c0_i32_2 = arith.constant 0 : i32
    return %c0_i32, %c0_i32_0, %c0_i32_1 : i32, i32, i32
  }
  func.func @transform_10(%arg0: i32) -> (i32, i32, i32) {
    %c0_i32 = arith.constant 0 : i32
    %c0_i32_0 = arith.constant 0 : i32
    %c0_i32_1 = arith.constant 0 : i32
    %c0_i32_2 = arith.constant 0 : i32
    return %c0_i32, %c0_i32_0, %c0_i32_1 : i32, i32, i32
  }
  func.func @transform_11(%arg0: i32) -> (i32, i32, i32) {
    %c0_i32 = arith.constant 0 : i32
    %c0_i32_0 = arith.constant 0 : i32
    %c0_i32_1 = arith.constant 0 : i32
    %c0_i32_2 = arith.constant 0 : i32
    return %c0_i32, %c0_i32_0, %c0_i32_1 : i32, i32, i32
  }
  func.func @transform_12(%arg0: i32) -> (i32, i32) {
    %c0_i32 = arith.constant 0 : i32
    %c0_i32_0 = arith.constant 0 : i32
    %c0_i32_1 = arith.constant 0 : i32
    return %c0_i32, %c0_i32_0 : i32, i32
  }
  func.func @transform_13(%arg0: i32) -> (i32, i32) {
    %c0_i32 = arith.constant 0 : i32
    %c0_i32_0 = arith.constant 0 : i32
    %c0_i32_1 = arith.constant 0 : i32
    return %c0_i32, %c0_i32_0 : i32, i32
  }
  func.func @transform_14(%arg0: i32) -> (i32, i32) {
    %c0_i32 = arith.constant 0 : i32
    %c0_i32_0 = arith.constant 0 : i32
    %c0_i32_1 = arith.constant 0 : i32
    return %c0_i32, %c0_i32_0 : i32, i32
  }
}

</mosaic_0001>

<bundles_post_ra>
// kernel: tpu_custom_call.1
= control target key start
LH: loop header
LB: loop body
LE: loop exit
PB: predicated region body
PF: predicated region fallthrough
CT: control target
= control target key end

     0   :  { %vm75_vm0 = vcmask 1041408   ;;  %vm68_vm1 = vcmask 15360   ;;  %vm245_vm2 = vcmask 261120   ;;  %vm168_vm3 = vcmask 1043456   ;;  %s2134_s23 = smov 96   ;;  %s2135_s18 = smov 32   ;;  %s3393_s4 = inlined_call_operand.vmem [shape: f32[2,32], index: 4, kind: input, shape index: {}]   ;;  %s3394_s0 = inlined_call_operand.vmem [shape: f32[16,2], index: 0, kind: input, shape index: {}]   ;;  %s3395_s8 = inlined_call_operand.vmem [shape: f32[2,32,96], index: 8, kind: input, shape index: {}]   ;;  %s3396_s9 = inlined_call_operand.vmem [shape: f32[2,1,96], index: 9, kind: input, shape index: {}]   ;;  %s3397_s5 = inlined_call_operand.vmem [shape: f32[4,32], index: 5, kind: input, shape index: {}]   ;;  %s3398_s1 = inlined_call_operand.vmem [shape: f32[128,4], index: 1, kind: input, shape index: {}]   ;;  %s3399_s6 = inlined_call_operand.vmem [shape: f32[2,32,32], index: 6, kind: input, shape index: {}]   ;;  %s3400_s7 = inlined_call_operand.vmem [shape: f32[2,1,32], index: 7, kind: input, shape index: {}]   ;;  %s3401_s2 = inlined_call_operand.vmem [shape: f32[128,32], index: 2, kind: input, shape index: {}]   ;;  %s3402_s3 = inlined_call_operand.vmem [shape: f32[16,128], index: 3, kind: input, shape index: {}]   ;;  %s3403_s10 = inlined_call_operand.vmem [shape: f32[2,32,32], index: 10, kind: input, shape index: {}]   ;;  %s3404_s11 = inlined_call_operand.vmem [shape: f32[2,1,32], index: 11, kind: input, shape index: {}]   ;;  %s3405_s12 = inlined_call_operand.vmem [shape: f32[32,2], index: 12, kind: input, shape index: {}]   ;;  %s3406_s13 = inlined_call_operand.vmem [shape: f32[1,2], index: 13, kind: input, shape index: {}]   ;;  %s3407_s14 = inlined_call_operand.vmem [shape: f32[128,2], index: 14, kind: output, shape index: {}]  }
   0x1   :  { %v67_v0 = vld [vmem:[%s3393_s4] sm:$0x3]  ;;  %v362_v2 = vld [vmem:[%s3395_s8 + $0x18] sm:$0xff]  ;;  %v361_v3 = vld [vmem:[%s3395_s8 + $0x10] sm:$0xff]  ;;  %vm119_vm4 = vcmask 31744  }
   0x2   :  { %v65_v1 = vld [vmem:[%s3394_s0] sm:$0xff]  ;;  %1822 = vmatpush.msk.msra.mxu0 %vm75_vm0, %v67_v0  ;;  %385 = vmatpush.msra.mxu3 %v362_v2  ;;  %v360_v4 = vld [vmem:[%s3395_s8 + $0x8] sm:$0xff]  ;;  %v104_v12 = vld [vmem:[%s3398_s1 + $0x10] sm:$0xff] }
   0x3   :  { %1823 = vmatmul.msk.f32.vlgmr.msra.gmra.mxu0 %vm68_vm1, %v65_v1  ;;  %v66_v5 = vld [vmem:[%s3394_s0 + $0x8] sm:$0xff]  ;;  %v359_v6 = vld [vmem:[%s3395_s8] sm:$0xff]  ;;  %v105_v13 = vld [vmem:[%s3398_s1 + $0x18] sm:$0xff] }
   0x4   :  { %386 = vmatpush.msra.mxu3 %v361_v3  ;;  %v118_v9 = vld [vmem:[%s3397_s5] sm:$0xf]  ;;  %v103_v11 = vld [vmem:[%s3398_s1 + $0x8] sm:$0xff]  ;;  %v108_v21 = vld [vmem:[%s3398_s1 + $0x30] sm:$0xff] }
   0x5   :  { %v102_v10 = vld [vmem:[%s3398_s1] sm:$0xff]  ;;  %1825 = vmatpush.msk.msra.mxu1 %vm168_vm3, %v118_v9  ;;  %v107_v19 = vld [vmem:[%s3398_s1 + $0x28] sm:$0xff]  ;;  %v109_v22 = vld [vmem:[%s3398_s1 + $0x38] sm:$0xff] }
   0x6   :  { %387 = vmatpush.msra.mxu3 %v360_v4  ;;  %1826 = vmatmul.msk.f32.vlgmr.msra.gmra.mxu1 %vm119_vm4, %v102_v10  ;;  %v106_v15 = vld [vmem:[%s3398_s1 + $0x20] sm:$0xff]  ;;  %v111_v24 = vld [vmem:[%s3398_s1 + $0x48] sm:$0xff]  ;;  %v112_v25 = vld [vmem:[%s3398_s1 + $0x50] sm:$0xff] }
   0x7   :  { %v2043_v16 = vld [vmem:[%s3396_s9] ss:$0 sm:$0xff]  ;;  %v240_v26 = vld [vmem:[%s3399_s6 + $0x18] sm:$0xff]  ;;  %v115_v29 = vld [vmem:[%s3398_s1 + $0x68] sm:$0xff] }
   0x8   :  { %388 = vmatpush.msra.mxu3 %v359_v6  ;;  %v110_v23 = vld [vmem:[%s3398_s1 + $0x40] sm:$0xff]  ;;  %306 = vmatpush.msra.mxu2 %v240_v26  ;;  %v113_v27 = vld [vmem:[%s3398_s1 + $0x58] sm:$0xff]  ;;  %v116_v30 = vld [vmem:[%s3398_s1 + $0x70] sm:$0xff] }
   0x9   :  { %v114_v28 = vld [vmem:[%s3398_s1 + $0x60] sm:$0xff]  ;;  %v117_v31 = vld [vmem:[%s3398_s1 + $0x78] sm:$0xff]  ;;  %v239_v32 = vld [vmem:[%s3399_s6 + $0x10] sm:$0xff] }
   0xa   :  { %307 = vmatpush.msra.mxu2 %v239_v32  ;;  %v238_v33 = vld [vmem:[%s3399_s6 + $0x8] sm:$0xff]  ;;  %v237_v34 = vld [vmem:[%s3399_s6] sm:$0xff]  ;;  %vm2347_vm5 = vmneg %vm245_vm2 }
   0xb   :  { %1824 = vmatmul.msk.f32.gmra.mxu0 %vm68_vm1, %v66_v5  ;;  %v47_v43 = vld [vmem:[%s3401_s2] sm:$0xff]  ;;  %v48_v45 = vld [vmem:[%s3401_s2 + $0x8] sm:$0xff]  ;;  %v49_v47 = vld [vmem:[%s3401_s2 + $0x10] sm:$0xff] }
   0xc   :  { %308 = vmatpush.msra.mxu2 %v238_v33  ;;  %v50_v49 = vld [vmem:[%s3401_s2 + $0x18] sm:$0xff]  ;;  %v51_v51 = vld [vmem:[%s3401_s2 + $0x20] sm:$0xff]  ;;  %v52_v53 = vld [vmem:[%s3401_s2 + $0x28] sm:$0xff] }
   0xd   :  { %v53_v55 = vld [vmem:[%s3401_s2 + $0x30] sm:$0xff]  ;;  %v54_v57 = vld [vmem:[%s3401_s2 + $0x38] sm:$0xff]  ;;  %v55_v59 = vld [vmem:[%s3401_s2 + $0x40] sm:$0xff] }
   0xe   :  { %1827 = vmatmul.msk.f32.gmra.mxu1 %vm119_vm4, %v103_v11  ;;  %309 = vmatpush.msra.mxu2 %v237_v34  ;;  %v56_v61 = vld [vmem:[%s3401_s2 + $0x48] sm:$0xff]  ;;  %v57_v63 = vld [vmem:[%s3401_s2 + $0x50] sm:$0xff]  ;;  %v58_v1 = vld [vmem:[%s3401_s2 + $0x58] sm:$0xff] }
   0xf   :  { %v1901_v3 = vld [vmem:[%s3399_s6 + $0x38] sm:$0xff]  ;;  %v59_v4 = vld [vmem:[%s3401_s2 + $0x60] sm:$0xff]  ;;  %v1900_v5 = vld [vmem:[%s3399_s6 + $0x30] sm:$0xff] }
  0x10   :  { %1188 = vmatpush.msrb.mxu3 %v1901_v3  ;;  %v1899_v6 = vld [vmem:[%s3399_s6 + $0x28] sm:$0xff]  ;;  %v1898_v9 = vld [vmem:[%s3399_s6 + $0x20] sm:$0xff]  ;;  %v2120_v39 = vld [vmem:[%s3401_s2 + $0x10] sm:$0xff] }
  0x11   :  { %v60_v11 = vld [vmem:[%s3401_s2 + $0x68] sm:$0xff] }
  0x12   :  { %1189 = vmatpush.msrb.mxu3 %v1900_v5 }
  0x14   :  { %1190 = vmatpush.msrb.mxu3 %v1899_v6 }
  0x16   :  { %1828 = vmatmul.msk.f32.gmra.mxu1 %vm119_vm4, %v104_v12  ;;  %1191 = vmatpush.msrb.mxu3 %v1898_v9 }
  0x1e   :  { %1829 = vmatmul.msk.f32.gmra.mxu1 %vm119_vm4, %v105_v13  ;;  %v61_v13 = vld [vmem:[%s3401_s2 + $0x70] sm:$0xff] }
  0x26   :  { %1830 = vmatmul.msk.f32.gmra.mxu1 %vm119_vm4, %v106_v15  ;;  %v62_v15 = vld [vmem:[%s3401_s2 + $0x78] sm:$0xff] }
  0x2e   :  { %1831 = vmatmul.msk.f32.gmra.mxu1 %vm119_vm4, %v107_v19 }
  0x36   :  { %1832 = vmatmul.msk.f32.gmra.mxu1 %vm119_vm4, %v108_v21 }
  0x3e   :  { %1833 = vmatmul.msk.f32.gmra.mxu1 %vm119_vm4, %v109_v22 }
  0x46   :  { %1834 = vmatmul.msk.f32.gmra.mxu1 %vm119_vm4, %v110_v23 }
  0x4e   :  { %1835 = vmatmul.msk.f32.gmra.mxu1 %vm119_vm4, %v111_v24 }
  0x56   :  { %1836 = vmatmul.msk.f32.gmra.mxu1 %vm119_vm4, %v112_v25 }
  0x5e   :  { %1837 = vmatmul.msk.f32.gmra.mxu1 %vm119_vm4, %v113_v27 }
  0x66   :  { %1838 = vmatmul.msk.f32.gmra.mxu1 %vm119_vm4, %v114_v28 }
  0x6e   :  { %1839 = vmatmul.msk.f32.gmra.mxu1 %vm119_vm4, %v115_v29 }
  0x76   :  { %1840 = vmatmul.msk.f32.gmra.mxu1 %vm119_vm4, %v116_v30 }
  0x7e   :  { %1841 = vmatmul.msk.f32.gmra.mxu1 %vm119_vm4, %v117_v31 }
  0x80   :  { %v2234_v7 = vpop.f32.mrf.mxu0 }
  0x81   :  { %1858 = vmatmul.msk.f32.vlgmr.msra.gmra.mxu3 %vm245_vm2, %v2234_v7 }
  0x83   :  { %v2332_v35 = vpop.f32.mrf.mxu1 }
  0x84   :  { %1842 = vmatmul.msk.f32.vlgmr.msra.gmra.mxu2 %vm245_vm2, %v2332_v35 }
  0x88   :  { %v2238_v8 = vpop.f32.mrf.mxu0 }
  0x89   :  { %1859 = vmatmul.msk.f32.gmra.mxu3 %vm245_vm2, %v2238_v8 }
  0x8b   :  { %v2336_v36 = vpop.f32.mrf.mxu1 }
  0x8c   :  { %1843 = vmatmul.msk.f32.gmra.mxu2 %vm245_vm2, %v2336_v36 }
  0x93   :  { %v2340_v37 = vpop.f32.mrf.mxu1 }
  0x94   :  { %1844 = vmatmul.msk.f32.gmra.mxu2 %vm245_vm2, %v2340_v37 }
  0x9b   :  { %v2344_v38 = vpop.f32.mrf.mxu1 }
  0x9c   :  { %1845 = vmatmul.msk.f32.gmra.mxu2 %vm245_vm2, %v2344_v38 }
  0xa3   :  { %v2355_v41 = vpop.f32.mrf.mxu1 }
  0xa4   :  { %1846 = vmatmul.msk.f32.gmra.mxu2 %vm245_vm2, %v2355_v41 }
  0xab   :  { %v2366_v44 = vpop.f32.mrf.mxu1 }
  0xac   :  { %1847 = vmatmul.msk.f32.gmra.mxu2 %vm245_vm2, %v2366_v44 }
  0xb3   :  { %v2376_v46 = vpop.f32.mrf.mxu1 }
  0xb4   :  { %1848 = vmatmul.msk.f32.gmra.mxu2 %vm245_vm2, %v2376_v46 }
  0xbb   :  { %v2384_v48 = vpop.f32.mrf.mxu1 }
  0xbc   :  { %1849 = vmatmul.msk.f32.gmra.mxu2 %vm245_vm2, %v2384_v48 }
  0xc3   :  { %v2392_v50 = vpop.f32.mrf.mxu1 }
  0xc4   :  { %1850 = vmatmul.msk.f32.gmra.mxu2 %vm245_vm2, %v2392_v50 }
  0xcb   :  { %v2400_v52 = vpop.f32.mrf.mxu1 }
  0xcc   :  { %1851 = vmatmul.msk.f32.gmra.mxu2 %vm245_vm2, %v2400_v52 }
  0xd3   :  { %v2408_v54 = vpop.f32.mrf.mxu1 }
  0xd4   :  { %1852 = vmatmul.msk.f32.gmra.mxu2 %vm245_vm2, %v2408_v54 }
  0xdb   :  { %v2416_v56 = vpop.f32.mrf.mxu1 }
  0xdc   :  { %1853 = vmatmul.msk.f32.gmra.mxu2 %vm245_vm2, %v2416_v56 }
  0xe3   :  { %v2424_v58 = vpop.f32.mrf.mxu1 }
  0xe4   :  { %1854 = vmatmul.msk.f32.gmra.mxu2 %vm245_vm2, %v2424_v58 }
  0xeb   :  { %v2432_v60 = vpop.f32.mrf.mxu1 }
  0xec   :  { %1855 = vmatmul.msk.f32.gmra.mxu2 %vm245_vm2, %v2432_v60 }
  0xf3   :  { %v2440_v62 = vpop.f32.mrf.mxu1 }
  0xf4   :  { %1856 = vmatmul.msk.f32.gmra.mxu2 %vm245_vm2, %v2440_v62 }
  0xfb   :  { %v2448_v0 = vpop.f32.mrf.mxu1 }
  0xfc   :  { %1857 = vmatmul.msk.f32.gmra.mxu2 %vm245_vm2, %v2448_v0 }
 0x104   :  { %v390_v14 = vpop.f32.mrf.mxu3 }
 0x105   :  { %v2276_v20 = vadd.f32 %v2043_v16, %v390_v14 }
 0x107   :  { %v311_v2 = vpop.f32.mrf.mxu2 }
 0x10c   :  { %v393_v17 = vpop.f32.mrf.mxu3 }
 0x10d   :  { %v2268_v18 = vadd.f32 %v2043_v16, %v393_v17  ;;  %v2487_v16 = vld [vmem:[%s3400_s7] ss:$0 sm:$0xff] }
 0x10e   :  { %v312_v17 = vadd.f32 %v2487_v16, %v311_v2 }
 0x10f   :  { %402 = vrot.lane.b32.xlu0 %v2268_v18, %s2134_s23  ;;  %v314_v10 = vpop.f32.mrf.mxu2 }
 0x110   :  { %v315_v24 = vadd.f32 %v2487_v16, %v314_v10 }
 0x117   :  { %400 = vrot.lane.b32.xlu0 %v2276_v20, %s2134_s23  ;;  %v317_v12 = vpop.f32.mrf.mxu2 }
 0x118   :  { %v318_v30 = vadd.f32 %v2487_v16, %v317_v12 }
 0x11f   :  { %v320_v14 = vpop.f32.mrf.mxu2 }
 0x127   :  { %v323_v22 = vpop.f32.mrf.mxu2 }
 0x12f   :  { %v326_v29 = vpop.f32.mrf.mxu2 }
 0x181   :  { %v403_v40 = vpop.permute.xlu0 %402 }
 0x182   :  { %1861 = vmatpush.msk.msrb.mxu0 %vm2347_vm5, %v403_v40 }
 0x189   :  { %v401_v42 = vpop.permute.xlu0 %400 }
 0x18a   :  { %1863 = vmatpush.msk.msrb.mxu0 %vm2347_vm5, %v401_v42  ;;  %v329_v42 = vpop.f32.mrf.mxu2 }
 0x18b   :  { %v330_v2 = vadd.f32 %v2487_v16, %v329_v42 }
 0x18c   :  { %1864 = vmatpush.msk.msrb.mxu0 %vm245_vm2, %v2268_v18 }
 0x18e   :  { %1865 = vmatpush.msk.msrb.mxu0 %vm245_vm2, %v2276_v20 }
 0x18f   :  { %1866 = vmatmul.msk.f32.vlgmr.msrb.gmra.mxu0 %vm245_vm2, %v47_v43 }
 0x197   :  { %1867 = vmatmul.msk.f32.gmra.mxu0 %vm245_vm2, %v48_v45 }
 0x19f   :  { %1868 = vmatmul.msk.f32.gmra.mxu0 %vm245_vm2, %v49_v47  ;;  %v324_v47 = vadd.f32 %v2487_v16, %v323_v22 }
 0x1a7   :  { %1869 = vmatmul.msk.f32.gmra.mxu0 %vm245_vm2, %v50_v49 }
 0x1af   :  { %1870 = vmatmul.msk.f32.gmra.mxu0 %vm245_vm2, %v51_v51 }
 0x1b7   :  { %1871 = vmatmul.msk.f32.gmra.mxu0 %vm245_vm2, %v52_v53 }
 0x1bf   :  { %1872 = vmatmul.msk.f32.gmra.mxu0 %vm245_vm2, %v53_v55 }
 0x1c7   :  { %1873 = vmatmul.msk.f32.gmra.mxu0 %vm245_vm2, %v54_v57  ;;  %v327_v57 = vadd.f32 %v2487_v16, %v326_v29 }
 0x1cf   :  { %1874 = vmatmul.msk.f32.gmra.mxu0 %vm245_vm2, %v55_v59 }
 0x1d7   :  { %1875 = vmatmul.msk.f32.gmra.mxu0 %vm245_vm2, %v56_v61 }
 0x1df   :  { %1876 = vmatmul.msk.f32.gmra.mxu0 %vm245_vm2, %v57_v63 }
 0x1e7   :  { %1877 = vmatmul.msk.f32.gmra.mxu0 %vm245_vm2, %v58_v1 }
 0x1ef   :  { %1878 = vmatmul.msk.f32.gmra.mxu0 %vm245_vm2, %v59_v4 }
 0x1f7   :  { %1879 = vmatmul.msk.f32.gmra.mxu0 %vm245_vm2, %v60_v11 }
 0x1ff   :  { %1880 = vmatmul.msk.f32.gmra.mxu0 %vm245_vm2, %v61_v13 }
 0x207   :  { %1881 = vmatmul.msk.f32.gmra.mxu0 %vm245_vm2, %v62_v15 }
 0x20c   :  { %v2491_v19 = vpop.f32.mrf.mxu0 }
 0x20d   :  { %v2494_v21 = vadd.f32 %v2491_v19, %v312_v17 }
 0x20f   :  { %v1086_v23 = vmax.f32 %v2494_v21, 0.0 }
 0x211   :  { %v2499_v25 = vadd.f32 %v1086_v23, %v2332_v35  ;;  %v321_v35 = vadd.f32 %v2487_v16, %v320_v14 }
 0x213   :  { %1903 = vmatmul.msk.f32.vlgmr.msrb.gmra.mxu3 %vm245_vm2, %v2499_v25 }
 0x214   :  { %v2503_v26 = vpop.f32.mrf.mxu0 }
 0x215   :  { %v2506_v27 = vadd.f32 %v2503_v26, %v315_v24 }
 0x217   :  { %v1087_v28 = vmax.f32 %v2506_v27, 0.0 }
 0x219   :  { %v2511_v31 = vadd.f32 %v1087_v28, %v2336_v36 }
 0x21b   :  { %1904 = vmatmul.msk.f32.gmra.mxu3 %vm245_vm2, %v2511_v31 }
 0x21c   :  { %v2515_v32 = vpop.f32.mrf.mxu0 }
 0x21d   :  { %v2518_v33 = vadd.f32 %v2515_v32, %v318_v30 }
 0x21f   :  { %v1088_v34 = vmax.f32 %v2518_v33, 0.0 }
 0x221   :  { %v2523_v40 = vadd.f32 %v1088_v34, %v2340_v37  ;;  %v332_v37 = vpop.f32.mrf.mxu2 }
 0x222   :  { %v333_v9 = vadd.f32 %v2487_v16, %v332_v37 }
 0x223   :  { %1905 = vmatmul.msk.f32.gmra.mxu3 %vm245_vm2, %v2523_v40 }
 0x224   :  { %v2527_v36 = vpop.f32.mrf.mxu0 }
 0x225   :  { %v2530_v43 = vadd.f32 %v2527_v36, %v321_v35 }
 0x227   :  { %v1089_v45 = vmax.f32 %v2530_v43, 0.0 }
 0x229   :  { %v2535_v49 = vadd.f32 %v1089_v45, %v2344_v38  ;;  %v335_v63 = vpop.f32.mrf.mxu2 }
 0x22a   :  { %v336_v13 = vadd.f32 %v2487_v16, %v335_v63 }
 0x22b   :  { %1906 = vmatmul.msk.f32.gmra.mxu3 %vm245_vm2, %v2535_v49 }
 0x22c   :  { %v2539_v51 = vpop.f32.mrf.mxu0 }
 0x22d   :  { %v2542_v53 = vadd.f32 %v2539_v51, %v324_v47  ;;  %v1882_v47 = vmul.f32 -1.442695, %v2494_v21 }
 0x22f   :  { %v1090_v55 = vmax.f32 %v2542_v53, 0.0 }
 0x231   :  { %v2547_v59 = vadd.f32 %v1090_v55, %v2355_v41  ;;  %v338_v6 = vpop.f32.mrf.mxu2  ;;  %v1883_v55 = vmul.f32 -1.442695, %v2506_v27 }
 0x232   :  { %v339_v24 = vadd.f32 %v2487_v16, %v338_v6 }
 0x233   :  { %1907 = vmatmul.msk.f32.gmra.mxu3 %vm245_vm2, %v2547_v59 }
 0x234   :  { %v2551_v38 = vpop.f32.mrf.mxu0 }
 0x235   :  { %v2554_v61 = vadd.f32 %v2551_v38, %v327_v57  ;;  %v1884_v57 = vmul.f32 -1.442695, %v2518_v33 }
 0x237   :  { %v1091_v1 = vmax.f32 %v2554_v61, 0.0 }
 0x239   :  { %v2559_v3 = vadd.f32 %v1091_v1, %v2366_v44  ;;  %v341_v15 = vpop.f32.mrf.mxu2 }
 0x23a   :  { %v342_v37 = vadd.f32 %v2487_v16, %v341_v15 }
 0x23b   :  { %1908 = vmatmul.msk.f32.gmra.mxu3 %vm245_vm2, %v2559_v3 }
 0x23c   :  { %v2563_v41 = vpop.f32.mrf.mxu0 }
 0x23d   :  { %v2566_v4 = vadd.f32 %v2563_v41, %v330_v2 }
 0x23f   :  { %v1092_v5 = vmax.f32 %v2566_v4, 0.0 }
 0x241   :  { %v2571_v10 = vadd.f32 %v1092_v5, %v2376_v46 }
 0x243   :  { %1909 = vmatmul.msk.f32.gmra.mxu3 %vm245_vm2, %v2571_v10 }
 0x244   :  { %v2575_v44 = vpop.f32.mrf.mxu0 }
 0x245   :  { %v2578_v11 = vadd.f32 %v2575_v44, %v333_v9 }
 0x247   :  { %v1093_v12 = vmax.f32 %v2578_v11, 0.0 }
 0x249   :  { %v2583_v14 = vadd.f32 %v1093_v12, %v2384_v48  ;;  %v344_v48 = vpop.f32.mrf.mxu2 }
 0x24a   :  { %v345_v27 = vadd.f32 %v2487_v16, %v344_v48 }
 0x24b   :  { %3419 = vst [vmem:[#allocation2_spill] sm:$0xff] %v2583_v14  ;;  %1910 = vmatmul.msk.f32.gmra.mxu3 %vm245_vm2, %v2583_v14 }
 0x24c   :  { %v497_v46 = vpop.f32.mrf.mxu0 }
 0x24d   :  { %v529_v17 = vadd.f32 %v497_v46, %v336_v13  ;;  %873 = vrot.lane.b32.xlu0 %v497_v46, %s2134_s23  ;;  %v1885_v13 = vmul.f32 -1.442695, %v2530_v43  ;;  %v1887_v43 = vmul.f32 -1.442695, %v2554_v61 }
 0x24f   :  { %v1890_v22 = vmul.f32 -1.442695, %v529_v17  ;;  %v1094_v23 = vmax.f32 %v529_v17, 0.0  ;;  %v1886_v17 = vmul.f32 -1.442695, %v2542_v53 }
 0x250   :  { %v1888_v53 = vmul.f32 -1.442695, %v2566_v4 }
 0x251   :  { %2050 = vpow2.f32 %v1890_v22  ;;  %v2590_v28 = vadd.f32 %v1094_v23, %v2392_v50  ;;  %v347_v21 = vpop.f32.mrf.mxu2 }
 0x253   :  { %3420 = vst [vmem:[#allocation3_spill] sm:$0xff] %v2590_v28  ;;  %1911 = vmatmul.msk.f32.gmra.mxu3 %vm245_vm2, %v2590_v28 }
 0x254   :  { %v500_v29 = vpop.f32.mrf.mxu0 }
 0x255   :  { %v530_v30 = vadd.f32 %v500_v29, %v339_v24  ;;  %875 = vrot.lane.b32.xlu2 %v500_v29, %s2134_s23 }
 0x257   :  { %v2051_v34 = vpop.eup %2050  ;;  %v1891_v35 = vmul.f32 -1.442695, %v530_v30  ;;  %v1095_v42 = vmax.f32 %v530_v30, 0.0 }
 0x258   :  { %v2595_v45 = vadd.f32 1.0, %v2051_v34 }
 0x259   :  { %2052 = vpow2.f32 %v1891_v35  ;;  %v2600_v50 = vadd.f32 %v1095_v42, %v2400_v52  ;;  %v350_v35 = vpop.f32.mrf.mxu2 }
 0x25a   :  { %2054 = vrcp.f32 %v2595_v45  ;;  %vm726_vm7 = vweird.f32 %v2595_v45 }
 0x25b   :  { %3421 = vst [vmem:[#allocation4_spill] sm:$0xff] %v2600_v50  ;;  %1912 = vmatmul.msk.f32.gmra.mxu3 %vm245_vm2, %v2600_v50  ;;  %2056 = vpow2.f32 %v1882_v47 }
 0x25c   :  { %v503_v63 = vpop.f32.mrf.mxu0  ;;  %2058 = vpow2.f32 %v1883_v55 }
 0x25d   :  { %v531_v1 = vadd.f32 %v503_v63, %v342_v37  ;;  %877 = vrot.lane.b32.xlu0 %v503_v63, %s2134_s23  ;;  %2060 = vpow2.f32 %v1884_v57  ;;  %v348_v57 = vadd.f32 %v2487_v16, %v347_v21 }
 0x25f   :  { %v2053_v2 = vpop.eup %2052  ;;  %v1892_v5 = vmul.f32 -1.442695, %v531_v1  ;;  %v1096_v52 = vmax.f32 %v531_v1, 0.0 }
 0x260   :  { %v2608_v6 = vpop.eup %2054  ;;  %v2610_v9 = vadd.f32 1.0, %v2053_v2  ;;  %v1889_v2 = vmul.f32 -1.442695, %v2578_v11 }
 0x261   :  { %2062 = vpow2.f32 %v1892_v5  ;;  %v2614_v33 = vadd.f32 %v1096_v52, %v2408_v54  ;;  %v722_v12 = vmul.f32 %v2608_v6, %v2595_v45  ;;  %v2057_v15 = vpop.eup %2056  ;;  %v730_v5 = vand.u32 2147483647, %v2595_v45 }
 0x262   :  { %2064 = vrcp.f32 %v2610_v9  ;;  %v2059_v23 = vpop.eup %2058  ;;  %v2624_v48 = vadd.f32 1.0, %v2057_v15  ;;  %vm727_vm6 = vweird.f32 %v2608_v6  ;;  %v745_v11 = vand.u32 2147483647, %v2610_v9 }
 0x263   :  { %3422 = vst [vmem:[#allocation5_spill] sm:$0xff] %v2614_v33  ;;  %1913 = vmatmul.msk.f32.gmra.mxu3 %vm245_vm2, %v2614_v33  ;;  %v723_v46 = vsub.f32 1.0, %v722_v12  ;;  %v2061_v54 = vpop.eup %2060  ;;  %2066 = vpow2.f32 %v1885_v13  ;;  %v2628_v37 = vadd.f32 1.0, %v2059_v23  ;;  %v747_v12 = vand.u32 2147483648, %v2610_v9  ;;  %vm2655_vm9 = vmor %vm726_vm7, %vm727_vm6 }
 0x264   :  { %v506_v22 = vpop.f32.mrf.mxu0  ;;  %2068 = vpow2.f32 %v1886_v17  ;;  %v2638_v1 = vadd.f32 1.0, %v2061_v54  ;;  %v351_v17 = vadd.f32 %v2487_v16, %v350_v35  ;;  %vm2659_vm10 = vcmp.eq.f32.partialorder %v730_v5, 8.507059e+37 }
 0x265   :  { %v532_v24 = vadd.f32 %v506_v22, %v345_v27  ;;  %879 = vrot.lane.b32.xlu2 %v506_v22, %s2134_s23  ;;  %v724_v42 = vmul.f32 %v2608_v6, %v723_v46  ;;  %v732_v27 = vand.u32 2147483648, %v2595_v45  ;;  %vm741_vm11 = vweird.f32 %v2610_v9 }
 0x266   :  { %vm746_vm13 = vcmp.eq.f32.partialorder %v745_v11, 8.507059e+37 }
 0x267   :  { %v2063_v29 = vpop.eup %2062  ;;  %v1893_v30 = vmul.f32 -1.442695, %v532_v24  ;;  %v1097_v34 = vmax.f32 %v532_v24, 0.0  ;;  %v725_v4 = vadd.f32 %v2608_v6, %v724_v42  ;;  %v733_v35 = vor.u32 1.1754944e-38, %v732_v27 }
 0x268   :  { %v2065_v47 = vpop.eup %2064  ;;  %v2631_v55 = vadd.f32 1.0, %v2063_v29  ;;  %v748_v42 = vor.u32 1.1754944e-38, %v747_v12 }
 0x269   :  { %2070 = vpow2.f32 %v1893_v30  ;;  %v2635_v63 = vadd.f32 %v1097_v34, %v2416_v56  ;;  %v737_v61 = vmul.f32 %v2065_v47, %v2610_v9  ;;  %v2067_v21 = vpop.eup %2066  ;;  %vm742_vm8 = vweird.f32 %v2065_v47 }
 0x26a   :  { %2072 = vrcp.f32 %v2631_v55  ;;  %v2069_v46 = vpop.eup %2068  ;;  %v729_v29 = vsel %vm2655_vm9, %v2608_v6, %v725_v4  ;;  %vm743_vm12 = vmor %vm741_vm11, %vm742_vm8  ;;  %v2677_v5 = vadd.f32 1.0, %v2067_v21  ;;  %vm756_vm15 = vweird.f32 %v2631_v55 }
 0x26b   :  { %3423 = vst [vmem:[#allocation6_spill] sm:$0xff] %v2635_v63  ;;  %2074 = vpow2.f32 %v1887_v43  ;;  %1914 = vmatmul.msk.f32.gmra.mxu3 %vm245_vm2, %v2635_v63  ;;  %v738_v56 = vsub.f32 1.0, %v737_v61  ;;  %v353_v61 = vpop.f32.mrf.mxu2  ;;  %v2682_v4 = vsel %vm2659_vm10, %v733_v35, %v729_v29 }
 0x26c   :  { %2076 = vpow2.f32 %v1888_v53  ;;  %v509_v52 = vpop.f32.mrf.mxu0 }
 0x26d   :  { %v533_v13 = vadd.f32 %v509_v52, %v348_v57  ;;  %881 = vrot.lane.b32.xlu0 %v509_v52, %s2134_s23  ;;  %v739_v15 = vmul.f32 %v2065_v47, %v738_v56  ;;  %2078 = vpow2.f32 %v1889_v2 }
 0x26f   :  { %v2071_v24 = vpop.eup %2070  ;;  %v1894_v45 = vmul.f32 -1.442695, %v533_v13  ;;  %v1098_v54 = vmax.f32 %v533_v13, 0.0  ;;  %v740_v43 = vadd.f32 %v2065_v47, %v739_v15 }
 0x270   :  { %v2667_v30 = vpop.eup %2072  ;;  %v2669_v34 = vadd.f32 1.0, %v2071_v24 }
 0x271   :  { %v2075_v53 = vpop.eup %2074  ;;  %2080 = vpow2.f32 %v1894_v45  ;;  %v2673_v9 = vadd.f32 %v1098_v54, %v2424_v58  ;;  %v744_v57 = vsel %vm743_vm12, %v2065_v47, %v740_v43  ;;  %v752_v6 = vmul.f32 %v2667_v30, %v2631_v55 }
 0x272   :  { %v2077_v2 = vpop.eup %2076  ;;  %2082 = vrcp.f32 %v2669_v34  ;;  %v2684_v56 = vsel %vm746_vm13, %v748_v42, %v744_v57  ;;  %v2692_v21 = vadd.f32 1.0, %v2075_v53  ;;  %v2717_v42 = vadd.f32 1.0, %v2069_v46 }
 0x273   :  { %3428 = vst [vmem:[#allocation7_spill] sm:$0xff] %v2673_v9  ;;  %2084 = vrcp.f32 %v2624_v48  ;;  %1915 = vmatmul.msk.f32.gmra.mxu3 %vm245_vm2, %v2673_v9  ;;  %v2003_v58 = vpack.i.bf16 %v2682_v4, %v2684_v56  ;;  %v753_v47 = vsub.f32 1.0, %v752_v6  ;;  %v2079_v52 = vpop.eup %2078  ;;  %v760_v53 = vand.u32 2147483647, %v2631_v55 }
 0x274   :  { %2086 = vrcp.f32 %v2628_v37  ;;  %v512_v27 = vpop.f32.mrf.mxu0  ;;  %v2700_v13 = vadd.f32 1.0, %v2079_v52  ;;  %vm757_vm14 = vweird.f32 %v2667_v30  ;;  %v777_v52 = vand.u32 2147483648, %v2669_v34 }
 0x275   :  { %2088 = vrcp.f32 %v2638_v1  ;;  %v534_v11 = vadd.f32 %v512_v27, %v351_v17  ;;  %2004 = vrot.lane.b32.xlu1 %v2003_v58, %s2135_s18  ;;  %869 = vrot.lane.b32.xlu0 %v2563_v41, %s2134_s23  ;;  %v754_v23 = vmul.f32 %v2667_v30, %v753_v47  ;;  %v2704_v17 = vadd.f32 1.0, %v2077_v2  ;;  %vm2744_vm3 = vmor %vm756_vm15, %vm757_vm14 }
 0x276   :  { %2090 = vrcp.f32 %v2677_v5  ;;  %883 = vrot.lane.b32.xlu2 %v512_v27, %s2134_s23  ;;  %v354_v41 = vadd.f32 %v2487_v16, %v353_v61  ;;  %v356_v61 = vpop.f32.mrf.mxu2  ;;  %v762_v58 = vand.u32 2147483648, %v2631_v55  ;;  %v775_v47 = vand.u32 2147483647, %v2669_v34 }
 0x277   :  { %v2081_v12 = vpop.eup %2080  ;;  %v1895_v15 = vmul.f32 -1.442695, %v534_v11  ;;  %v1099_v22 = vmax.f32 %v534_v11, 0.0  ;;  %2092 = vrcp.f32 %v2692_v21  ;;  %vm2748_vm4 = vcmp.eq.f32.partialorder %v760_v53, 8.507059e+37 }
 0x278   :  { %v2083_v24 = vpop.eup %2082  ;;  %v2706_v45 = vadd.f32 1.0, %v2081_v12  ;;  %vm771_vm6 = vweird.f32 %v2669_v34  ;;  %vm776_vm8 = vcmp.eq.f32.partialorder %v775_v47, 8.507059e+37  ;;  %v778_v53 = vor.u32 1.1754944e-38, %v777_v52 }
 0x279   :  { %v2708_v54 = vpop.eup %2084  ;;  %2094 = vpow2.f32 %v1895_v15  ;;  %v2712_v29 = vadd.f32 %v1099_v22, %v2432_v60  ;;  %v767_v43 = vmul.f32 %v2083_v24, %v2669_v34  ;;  %v755_v60 = vadd.f32 %v2667_v30, %v754_v23 }
 0x27a   :  { %v2715_v35 = vpop.eup %2086  ;;  %2096 = vrcp.f32 %v2706_v45  ;;  %vm772_vm0 = vweird.f32 %v2083_v24  ;;  %v357_v15 = vadd.f32 %v2487_v16, %v356_v61  ;;  %vm786_vm10 = vweird.f32 %v2706_v45 }
 0x27b   :  { %3429 = vst [vmem:[#allocation8_spill] sm:$0xff] %v2712_v29  ;;  %v2721_v57 = vpop.eup %2088  ;;  %2098 = vrcp.f32 %v2700_v13  ;;  %1916 = vmatmul.msk.f32.gmra.mxu3 %vm245_vm2, %v2712_v29  ;;  %v768_v6 = vsub.f32 1.0, %v767_v43  ;;  %v759_v43 = vsel %vm2744_vm3, %v2667_v30, %v755_v60  ;;  %vm773_vm7 = vmor %vm771_vm6, %vm772_vm0  ;;  %vm711_vm14 = vweird.f32 %v2700_v13 }
 0x27c   :  { %v2728_v2 = vpop.eup %2090  ;;  %2100 = vrcp.f32 %v2704_v17  ;;  %v515_v46 = vpop.f32.mrf.mxu0 }
 0x27d   :  { %v535_v27 = vadd.f32 %v515_v46, %v354_v41  ;;  %865 = vrot.lane.b32.xlu0 %v2539_v51, %s2134_s23  ;;  %885 = vrot.lane.b32.xlu1 %v515_v46, %s2134_s23  ;;  %v769_v11 = vmul.f32 %v2083_v24, %v768_v6  ;;  %v2738_v12 = vpop.eup %2092  ;;  %2102 = vrcp.f32 %v2717_v42  ;;  %v763_v46 = vor.u32 1.1754944e-38, %v762_v58 }
 0x27e   :  { %v2787_v51 = vmul.f32 %v2708_v54, %v2624_v48 }
 0x27f   :  { %v2095_v55 = vpop.eup %2094  ;;  %v1896_v23 = vmul.f32 -1.442695, %v535_v27  ;;  %v1100_v41 = vmax.f32 %v535_v27, 0.0  ;;  %v770_v16 = vadd.f32 %v2083_v24, %v769_v11  ;;  %v2773_v58 = vsel %vm2748_vm4, %v763_v46, %v759_v43 }
 0x280   :  { %v2756_v61 = vpop.eup %2096  ;;  %v2758_v6 = vadd.f32 1.0, %v2095_v55  ;;  %v2791_v55 = vmul.f32 %v2715_v35, %v2628_v37  ;;  %v677_v43 = vmul.f32 %v2738_v12, %v2692_v21 }
 0x281   :  { %v2761_v29 = vpop.eup %2098  ;;  %2104 = vpow2.f32 %v1896_v23  ;;  %v2764_v34 = vadd.f32 %v1100_v41, %v2440_v62  ;;  %v774_v27 = vsel %vm773_vm7, %v2083_v24, %v770_v16  ;;  %v782_v30 = vmul.f32 %v2756_v61, %v2706_v45 }
 0x282   :  { %v2768_v60 = vpop.eup %2100  ;;  %2106 = vrcp.f32 %v2758_v6  ;;  %v2775_v47 = vsel %vm776_vm8, %v778_v53, %v774_v27  ;;  %v707_v22 = vmul.f32 %v2761_v29, %v2700_v13  ;;  %vm787_vm9 = vweird.f32 %v2756_v61 }
 0x283   :  { %3434 = vst [vmem:[#allocation9_spill] sm:$0xff] %v2764_v34  ;;  %1917 = vmatmul.msk.f32.gmra.mxu3 %vm245_vm2, %v2764_v34  ;;  %v2008_v62 = vpack.i.bf16 %v2773_v58, %v2775_v47  ;;  %v783_v24 = vsub.f32 1.0, %v782_v30  ;;  %v2781_v52 = vpop.eup %2102  ;;  %v692_v41 = vmul.f32 %v2768_v60, %v2704_v17  ;;  %vm2836_vm12 = vmor %vm786_vm10, %vm787_vm9  ;;  %vm697_vm13 = vweird.f32 %v2768_v60 }
 0x284   :  { %v518_v11 = vpop.f32.mrf.mxu0  ;;  %v2803_v30 = vmul.f32 %v2781_v52, %v2717_v42  ;;  %vm801_vm15 = vweird.f32 %v2758_v6  ;;  %vm712_vm0 = vweird.f32 %v2761_v29  ;;  %vm666_vm8 = vweird.f32 %v2717_v42 }
 0x285   :  { %v536_v23 = vadd.f32 %v518_v11, %v357_v15  ;;  %861 = vrot.lane.b32.xlu0 %v2515_v32, %s2134_s23  ;;  %2009 = vrot.lane.b32.xlu1 %v2008_v62, %s2135_s18  ;;  %v784_v27 = vmul.f32 %v2756_v61, %v783_v24  ;;  %v708_v32 = vsub.f32 1.0, %v707_v22  ;;  %v2815_v24 = vmul.f32 %v2721_v57, %v2638_v1  ;;  %vm2872_vm7 = vmor %vm711_vm14, %vm712_vm0 }
 0x286   :  { %v693_v33 = vsub.f32 1.0, %v692_v41  ;;  %v2820_v22 = vmul.f32 %v2728_v2, %v2677_v5  ;;  %v792_v62 = vand.u32 2147483648, %v2706_v45  ;;  %v807_v41 = vand.u32 2147483648, %v2758_v6 }
 0x287   :  { %v2105_v16 = vpop.eup %2104  ;;  %v1897_v46 = vmul.f32 -1.442695, %v536_v23  ;;  %v1101_v53 = vmax.f32 %v536_v23, 0.0  ;;  %vm696_vm9 = vweird.f32 %v2704_v17 }
 0x288   :  { %v2107_v15 = vpop.eup %2106  ;;  %v2805_v34 = vadd.f32 1.0, %v2105_v16  ;;  %v678_v16 = vsub.f32 1.0, %v677_v43  ;;  %v709_v43 = vmul.f32 %v2761_v29, %v708_v32  ;;  %v808_v28 = vor.u32 1.1754944e-38, %v807_v41  ;;  %vm2888_vm10 = vmor %vm696_vm9, %vm697_vm13 }
 0x289   :  { %2108 = vpow2.f32 %v1897_v46  ;;  %v2810_v63 = vadd.f32 %v1101_v53, %v2448_v0  ;;  %v797_v23 = vmul.f32 %v2107_v15, %v2758_v6  ;;  %v785_v0 = vadd.f32 %v2756_v61, %v784_v27 }
 0x28a   :  { %2110 = vrcp.f32 %v2805_v34  ;;  %v663_v53 = vsub.f32 1.0, %v2803_v30  ;;  %v790_v27 = vand.u32 2147483647, %v2706_v45  ;;  %vm802_vm11 = vweird.f32 %v2107_v15 }
 0x28b   :  { %3435 = vst [vmem:[#allocation10_spill] sm:$0xff] %v2810_v63  ;;  %1918 = vmatmul.msk.f32.gmra.mxu3 %vm245_vm2, %v2810_v63  ;;  %v798_v46 = vsub.f32 1.0, %v797_v23  ;;  %v805_v23 = vand.u32 2147483647, %v2758_v6  ;;  %v694_v63 = vmul.f32 %v2768_v60, %v693_v33  ;;  %v789_v45 = vsel %vm2836_vm12, %v2756_v61, %v785_v0  ;;  %vm803_vm3 = vmor %vm801_vm15, %vm802_vm11 }
 0x28c   :  { %v793_v33 = vor.u32 1.1754944e-38, %v792_v62  ;;  %vm791_vm4 = vcmp.eq.f32.partialorder %v790_v27, 8.507059e+37  ;;  %v717_v0 = vand.u32 2147483648, %v2700_v13  ;;  %v702_v27 = vand.u32 2147483648, %v2704_v17 }
 0x28d   :  { %857 = vrot.lane.b32.xlu0 %v2491_v19, %s2134_s23  ;;  %887 = vrot.lane.b32.xlu1 %v518_v11, %s2134_s23  ;;  %v799_v9 = vmul.f32 %v2107_v15, %v798_v46  ;;  %v679_v19 = vmul.f32 %v2738_v12, %v678_v16  ;;  %v710_v16 = vadd.f32 %v2761_v29, %v709_v43  ;;  %vm806_vm6 = vcmp.eq.f32.partialorder %v805_v23, 8.507059e+37 }
 0x28e   :  { %v2858_v61 = vsel %vm791_vm4, %v793_v33, %v789_v45  ;;  %v695_v41 = vadd.f32 %v2768_v60, %v694_v63  ;;  %v715_v43 = vand.u32 2147483647, %v2700_v13  ;;  %v700_v63 = vand.u32 2147483647, %v2704_v17 }
 0x28f   :  { %v2109_v32 = vpop.eup %2108  ;;  %v800_v11 = vadd.f32 %v2107_v15, %v799_v9  ;;  %v714_v13 = vsel %vm2872_vm7, %v2761_v29, %v710_v16  ;;  %v670_v30 = vand.u32 2147483647, %v2717_v42  ;;  %v680_v45 = vadd.f32 %v2738_v12, %v679_v19 }
 0x290   :  { %v2849_v46 = vpop.eup %2110  ;;  %v2851_v50 = vadd.f32 1.0, %v2109_v32  ;;  %vm682_vm11 = vweird.f32 %v2738_v12  ;;  %v699_v17 = vsel %vm2888_vm10, %v2768_v60, %v695_v41  ;;  %vm716_vm12 = vcmp.eq.f32.partialorder %v715_v43, 8.507059e+37 }
 0x291   :  { %v804_v14 = vsel %vm803_vm3, %v2107_v15, %v800_v11  ;;  %v812_v9 = vmul.f32 %v2849_v46, %v2805_v34  ;;  %v672_v29 = vand.u32 2147483648, %v2717_v42  ;;  %v703_v16 = vor.u32 1.1754944e-38, %v702_v27 }
 0x292   :  { %2112 = vrcp.f32 %v2851_v50  ;;  %v2860_v6 = vsel %vm806_vm6, %v808_v28, %v804_v14  ;;  %v633_v14 = vsub.f32 1.0, %v2815_v24  ;;  %v648_v28 = vsub.f32 1.0, %v2820_v22 }
 0x293   :  { %v2013_v62 = vpack.i.bf16 %v2858_v61, %v2860_v6  ;;  %v813_v15 = vsub.f32 1.0, %v812_v9  ;;  %v718_v24 = vor.u32 1.1754944e-38, %v717_v0  ;;  %v664_v22 = vmul.f32 %v2781_v52, %v663_v53 }
 0x294   :  { %vm681_vm13 = vweird.f32 %v2692_v21  ;;  %v649_v53 = vmul.f32 %v2728_v2, %v648_v28  ;;  %vm701_vm14 = vcmp.eq.f32.partialorder %v700_v63, 8.507059e+37  ;;  %vm667_vm15 = vweird.f32 %v2781_v52 }
 0x295   :  { %2014 = vrot.lane.b32.xlu1 %v2013_v62, %s2135_s18  ;;  %v814_v11 = vmul.f32 %v2849_v46, %v813_v15  ;;  %v2900_v9 = vsel %vm716_vm12, %v718_v24, %v714_v13  ;;  %vm2905_vm0 = vmor %vm681_vm13, %vm682_vm11  ;;  %v685_v60 = vand.u32 2147483647, %v2692_v21  ;;  %v2911_v62 = vsel %vm701_vm14, %v703_v16, %v699_v17 }
 0x296   :  { %v665_v41 = vadd.f32 %v2781_v52, %v664_v22  ;;  %v684_v43 = vsel %vm2905_vm0, %v2738_v12, %v680_v45  ;;  %v687_v15 = vand.u32 2147483648, %v2692_v21  ;;  %v2023_v27 = vpack.i.bf16 %v2911_v62, %v2900_v9  ;;  %vm2933_vm9 = vmor %vm666_vm8, %vm667_vm15 }
 0x297   :  { %v815_v23 = vadd.f32 %v2849_v46, %v814_v11  ;;  %vm817_vm3 = vweird.f32 %v2849_v46  ;;  %vm637_vm4 = vweird.f32 %v2721_v57  ;;  %vm651_vm6 = vweird.f32 %v2677_v5 }
 0x298   :  { %v2113_v33 = vpop.eup %2112  ;;  %vm816_vm7 = vweird.f32 %v2805_v34  ;;  %v820_v63 = vand.u32 2147483647, %v2805_v34  ;;  %v822_v12 = vand.u32 2147483648, %v2805_v34  ;;  %v837_v21 = vand.u32 2147483648, %v2851_v50 }
 0x299   :  { %v827_v0 = vmul.f32 %v2113_v33, %v2851_v50  ;;  %vm831_vm10 = vweird.f32 %v2851_v50  ;;  %vm832_vm11 = vweird.f32 %v2113_v33  ;;  %v835_v24 = vand.u32 2147483647, %v2851_v50  ;;  %vm2945_vm13 = vmor %vm816_vm7, %vm817_vm3 }
 0x29a   :  { %vm2939_vm12 = vcmp.eq.f32.partialorder %v670_v30, 8.507059e+37  ;;  %v688_v22 = vor.u32 1.1754944e-38, %v687_v15  ;;  %v634_v42 = vmul.f32 %v2721_v57, %v633_v14  ;;  %vm652_vm8 = vweird.f32 %v2728_v2  ;;  %vm833_vm15 = vmor %vm831_vm10, %vm832_vm11 }
 0x29b   :  { %v828_v28 = vsub.f32 1.0, %v827_v0  ;;  %v669_v17 = vsel %vm2933_vm9, %v2781_v52, %v665_v41  ;;  %vm686_vm14 = vcmp.eq.f32.partialorder %v685_v60, 8.507059e+37  ;;  %v819_v30 = vsel %vm2945_vm13, %v2849_v46, %v815_v23  ;;  %vm653_vm7 = vmor %vm651_vm6, %vm652_vm8 }
 0x29c   :  { %v673_v16 = vor.u32 1.1754944e-38, %v672_v29  ;;  %v2957_v19 = vsel %vm686_vm14, %v688_v22, %v684_v43  ;;  %v823_v0 = vor.u32 1.1754944e-38, %v822_v12  ;;  %v838_v14 = vor.u32 1.1754944e-38, %v837_v21 }
 0x29d   :  { %2024 = vrot.lane.b32.xlu1 %v2023_v27, %s2135_s18  ;;  %v829_v32 = vmul.f32 %v2113_v33, %v828_v28  ;;  %vm821_vm0 = vcmp.eq.f32.partialorder %v820_v63, 8.507059e+37  ;;  %vm836_vm3 = vcmp.eq.f32.partialorder %v835_v24, 8.507059e+37  ;;  %v650_v27 = vadd.f32 %v2728_v2, %v649_v53 }
 0x29e   :  { %v2964_v52 = vsel %vm2939_vm12, %v673_v16, %v669_v17  ;;  %v2966_v60 = vsel %vm821_vm0, %v823_v0, %v819_v30  ;;  %v657_v29 = vand.u32 2147483648, %v2677_v5  ;;  %v635_v43 = vadd.f32 %v2721_v57, %v634_v42 }
 0x29f   :  { %v830_v11 = vadd.f32 %v2113_v33, %v829_v32  ;;  %v2028_v41 = vpack.i.bf16 %v2964_v52, %v2957_v19  ;;  %v642_v53 = vand.u32 2147483648, %v2638_v1  ;;  %vm636_vm9 = vweird.f32 %v2638_v1 }
 0x2a0   :  { %v640_v23 = vand.u32 2147483647, %v2638_v1  ;;  %v654_v28 = vsel %vm653_vm7, %v2728_v2, %v650_v27  ;;  %v3450_v63 = vsub.f32 1.0, %v2791_v55  ;;  %vm638_vm10 = vmor %vm636_vm9, %vm637_vm4  ;;  %v658_v21 = vor.u32 1.1754944e-38, %v657_v29 }
 0x2a1   :  { %v834_v15 = vsel %vm833_vm15, %v2113_v33, %v830_v11  ;;  %v655_v33 = vand.u32 2147483647, %v2677_v5  ;;  %v639_v5 = vsel %vm638_vm10, %v2721_v57, %v635_v43  ;;  %v3451_v13 = vsub.f32 1.0, %v2787_v51 }
 0x2a2   :  { %v839_v46 = vsel %vm836_vm3, %v838_v14, %v834_v15  ;;  %v619_v12 = vmul.f32 %v2715_v35, %v3450_v63  ;;  %v643_v24 = vor.u32 1.1754944e-38, %v642_v53  ;;  %vm641_vm11 = vcmp.eq.f32.partialorder %v640_v23, 8.507059e+37 }
 0x2a3   :  { %v2018_v50 = vpack.i.bf16 %v2966_v60, %v839_v46  ;;  %vm656_vm6 = vcmp.eq.f32.partialorder %v655_v33, 8.507059e+37  ;;  %v604_v32 = vmul.f32 %v2708_v54, %v3451_v13  ;;  %vm622_vm12 = vweird.f32 %v2715_v35 }
 0x2a4   :  { %v2993_v34 = vsel %vm656_vm6, %v658_v21, %v654_v28  ;;  %v620_v1 = vadd.f32 %v2715_v35, %v619_v12  ;;  %v2997_v2 = vsel %vm641_vm11, %v643_v24, %v639_v5  ;;  %vm607_vm4 = vweird.f32 %v2708_v54 }
 0x2a5   :  { %2029 = vrot.lane.b32.xlu1 %v2028_v41, %s2135_s18  ;;  %2019 = vrot.lane.b32.xlu2 %v2018_v50, %s2135_s18  ;;  %v627_v55 = vand.u32 2147483648, %v2628_v37  ;;  %v2033_v57 = vpack.i.bf16 %v2997_v2, %v2993_v34  ;;  %v605_v51 = vadd.f32 %v2708_v54, %v604_v32  ;;  %vm621_vm13 = vweird.f32 %v2628_v37 }
 0x2a6   :  { %v625_v22 = vand.u32 2147483647, %v2628_v37  ;;  %v612_v45 = vand.u32 2147483648, %v2624_v48  ;;  %vm623_vm8 = vmor %vm621_vm13, %vm622_vm12  ;;  %vm606_vm14 = vweird.f32 %v2624_v48  ;;  %v610_v42 = vand.u32 2147483647, %v2624_v48 }
 0x2a7   :  { %v624_v17 = vsel %vm623_vm8, %v2715_v35, %v620_v1  ;;  %vm608_vm15 = vmor %vm606_vm14, %vm607_vm4  ;;  %v628_v30 = vor.u32 1.1754944e-38, %v627_v55 }
 0x2a8   :  { %v609_v11 = vsel %vm608_vm15, %v2708_v54, %v605_v51  ;;  %vm626_vm0 = vcmp.eq.f32.partialorder %v625_v22, 8.507059e+37  ;;  %v613_v37 = vor.u32 1.1754944e-38, %v612_v45  ;;  %vm611_vm3 = vcmp.eq.f32.partialorder %v610_v42, 8.507059e+37 }
 0x2a9   :  { %v3014_v16 = vsel %vm626_vm0, %v628_v30, %v624_v17 }
 0x2aa   :  { %v3016_v0 = vsel %vm611_vm3, %v613_v37, %v609_v11 }
 0x2ad   :  { %2034 = vrot.lane.b32.xlu1 %v2033_v57, %s2135_s18  ;;  %871 = vrot.lane.b32.xlu2 %v2575_v44, %s2134_s23  ;;  %v2038_v44 = vpack.i.bf16 %v3016_v0, %v3014_v16 }
 0x2af   :  { %v876_v54 = vpop.permute.xlu2 %875 }
 0x2b0   :  { %v914_v42 = vmul.f32 %v876_v54, %v2684_v56 }
 0x2b5   :  { %2039 = vrot.lane.b32.xlu1 %v2038_v44, %s2135_s18  ;;  %867 = vrot.lane.b32.xlu2 %v2551_v38, %s2134_s23 }
 0x2bd   :  { %863 = vrot.lane.b32.xlu2 %v2527_v36, %s2134_s23 }
 0x2bf   :  { %v874_v35 = vpop.permute.xlu0 %873  ;;  %v880_v15 = vpop.permute.xlu2 %879 }
 0x2c5   :  { %859 = vrot.lane.b32.xlu2 %v2503_v26, %s2134_s23 }
 0x2cf   :  { %v878_v27 = vpop.permute.xlu0 %877 }
 0x2d0   :  { %v884_v41 = vpop.permute.xlu2 %883  ;;  %v915_v51 = vmul.f32 %v878_v27, %v2773_v58 }
 0x2d1   :  { %v918_v12 = vmul.f32 %v884_v41, %v2860_v6 }
 0x2df   :  { %v882_v50 = vpop.permute.xlu0 %881 }
 0x2e7   :  { %v2005_v48 = vpop.permute.xlu1 %2004  ;;  %v870_v32 = vpop.permute.xlu0 %869 }
 0x2e8   :  { %v2006_v22 = vunpack.i.l.bf16 %v2005_v48  ;;  %v911_v56 = vmul.f32 %v870_v32, %v2911_v62 }
 0x2ea   :  { %v994_v37 = vsel %vm245_vm2, %v914_v42, %v2006_v22 }
 0x2ef   :  { %v886_v14 = vpop.permute.xlu1 %885  ;;  %v866_v44 = vpop.permute.xlu0 %865 }
 0x2f0   :  { %v919_v28 = vmul.f32 %v886_v14, %v2966_v60  ;;  %v916_v60 = vmul.f32 %v880_v15, %v2775_v47  ;;  %v913_v47 = vmul.f32 %v874_v35, %v2682_v4  ;;  %v909_v41 = vmul.f32 %v866_v44, %v2964_v52 }
 0x2f7   :  { %v2010_v29 = vpop.permute.xlu1 %2009  ;;  %v862_v62 = vpop.permute.xlu0 %861 }
 0x2f8   :  { %v2011_v24 = vunpack.i.l.bf16 %v2010_v29  ;;  %v2012_v55 = vunpack.i.h.bf16 %v2010_v29 }
 0x2fa   :  { %v996_v6 = vsel %vm245_vm2, %v916_v60, %v2011_v24  ;;  %v995_v17 = vsel %vm245_vm2, %v915_v51, %v2012_v55 }
 0x2ff   :  { %v888_v43 = vpop.permute.xlu1 %887  ;;  %v2020_v53 = vpop.permute.xlu2 %2019 }
 0x300   :  { %v920_v33 = vmul.f32 %v888_v43, %v839_v46  ;;  %v2022_v23 = vunpack.i.h.bf16 %v2020_v53  ;;  %v2021_v38 = vunpack.i.l.bf16 %v2020_v53  ;;  %v917_v46 = vmul.f32 %v882_v50, %v2858_v61 }
 0x301   :  { %v2007_v61 = vunpack.i.h.bf16 %v2005_v48 }
 0x302   :  { %v1000_v36 = vsel %vm245_vm2, %v920_v33, %v2021_v38  ;;  %v999_v26 = vsel %vm245_vm2, %v919_v28, %v2022_v23  ;;  %v907_v38 = vmul.f32 %v862_v62, %v2997_v2  ;;  %v63_v2 = vld [vmem:[%s3402_s3] sm:$0xff] }
 0x303   :  { %1001 = vmatpush.msrb.mxu2 %v1000_v36  ;;  %v993_v15 = vsel %vm245_vm2, %v913_v47, %v2007_v61 }
 0x305   :  { %1002 = vmatpush.msrb.mxu2 %v999_v26  ;;  %v858_v26 = vpop.permute.xlu0 %857 }
 0x307   :  { %v2015_v63 = vpop.permute.xlu1 %2014  ;;  %v872_v13 = vpop.permute.xlu2 %871 }
 0x308   :  { %v2017_v21 = vunpack.i.h.bf16 %v2015_v63  ;;  %v2016_v5 = vunpack.i.l.bf16 %v2015_v63  ;;  %v912_v58 = vmul.f32 %v872_v13, %v2900_v9  ;;  %v905_v13 = vmul.f32 %v858_v26, %v3016_v0 }
 0x30a   :  { %v998_v1 = vsel %vm245_vm2, %v918_v12, %v2016_v5  ;;  %v997_v57 = vsel %vm245_vm2, %v917_v46, %v2017_v21  ;;  %v64_v46 = vld [vmem:[%s3402_s3 + $0x8] sm:$0xff] }
 0x30b   :  { %1003 = vmatpush.msrb.mxu2 %v998_v1 }
 0x30d   :  { %1004 = vmatpush.msrb.mxu2 %v997_v57 }
 0x30f   :  { %v2025_v45 = vpop.permute.xlu1 %2024  ;;  %1005 = vmatpush.msrb.mxu2 %v996_v6  ;;  %v868_v30 = vpop.permute.xlu2 %867 }
 0x310   :  { %v2026_v11 = vunpack.i.l.bf16 %v2025_v45  ;;  %v2027_v14 = vunpack.i.h.bf16 %v2025_v45  ;;  %v910_v27 = vmul.f32 %v868_v30, %v2957_v19 }
 0x311   :  { %1006 = vmatpush.msrb.mxu2 %v995_v17 }
 0x312   :  { %v992_v48 = vsel %vm245_vm2, %v912_v58, %v2026_v11  ;;  %v991_v29 = vsel %vm245_vm2, %v911_v56, %v2027_v14 }
 0x313   :  { %1007 = vmatpush.msrb.mxu2 %v994_v37 }
 0x315   :  { %1008 = vmatpush.msrb.mxu2 %v993_v15 }
 0x317   :  { %v2030_v54 = vpop.permute.xlu1 %2029  ;;  %1009 = vmatpush.msrb.mxu2 %v992_v48  ;;  %v864_v50 = vpop.permute.xlu2 %863 }
 0x318   :  { %v2032_v4 = vunpack.i.h.bf16 %v2030_v54  ;;  %v2031_v35 = vunpack.i.l.bf16 %v2030_v54  ;;  %v908_v53 = vmul.f32 %v864_v50, %v2993_v34 }
 0x319   :  { %1010 = vmatpush.msrb.mxu2 %v991_v29  ;;  %v1922_v29 = vld [vmem:[%s3395_s8 + $0x38] sm:$0xff] }
 0x31a   :  { %v990_v9 = vsel %vm245_vm2, %v910_v27, %v2031_v35  ;;  %v989_v43 = vsel %vm245_vm2, %v909_v41, %v2032_v4  ;;  %v1921_v41 = vld [vmem:[%s3395_s8 + $0x30] sm:$0xff]  ;;  %1269 = vmatpush.msrb.mxu1 %v1922_v29 }
 0x31b   :  { %1011 = vmatpush.msrb.mxu2 %v990_v9  ;;  %v1920_v9 = vld [vmem:[%s3395_s8 + $0x28] sm:$0xff] }
 0x31c   :  { %1270 = vmatpush.msrb.mxu1 %v1921_v41 }
 0x31d   :  { %1012 = vmatpush.msrb.mxu2 %v989_v43 }
 0x31e   :  { %1271 = vmatpush.msrb.mxu1 %v1920_v9 }
 0x31f   :  { %v2035_v33 = vpop.permute.xlu1 %2034  ;;  %v860_v36 = vpop.permute.xlu2 %859 }
 0x320   :  { %v2037_v23 = vunpack.i.h.bf16 %v2035_v33  ;;  %v2036_v19 = vunpack.i.l.bf16 %v2035_v33  ;;  %v906_v12 = vmul.f32 %v860_v36, %v3014_v16 }
 0x322   :  { %v988_v28 = vsel %vm245_vm2, %v908_v53, %v2036_v19  ;;  %v987_v52 = vsel %vm245_vm2, %v907_v38, %v2037_v23  ;;  %v1919_v19 = vld [vmem:[%s3395_s8 + $0x20] sm:$0xff] }
 0x323   :  { %1013 = vmatpush.msrb.mxu2 %v988_v28  ;;  %1272 = vmatpush.msrb.mxu1 %v1919_v19 }
 0x325   :  { %1014 = vmatpush.msrb.mxu2 %v987_v52 }
 0x327   :  { %v2040_v63 = vpop.permute.xlu1 %2039 }
 0x328   :  { %v2042_v21 = vunpack.i.h.bf16 %v2040_v63  ;;  %v2041_v5 = vunpack.i.l.bf16 %v2040_v63 }
 0x32a   :  { %v986_v34 = vsel %vm245_vm2, %v906_v12, %v2041_v5  ;;  %v985_v32 = vsel %vm245_vm2, %v905_v13, %v2042_v21  ;;  %v2119_v5 = vld [vmem:[%s3401_s2 + $0x8] sm:$0xff]  ;;  %v2121_v13 = vld [vmem:[%s3401_s2 + $0x18] sm:$0xff] }
 0x32b   :  { %1015 = vmatpush.msrb.mxu2 %v986_v34  ;;  %v2122_v34 = vld [vmem:[%s3401_s2 + $0x20] sm:$0xff] }
 0x32d   :  { %1016 = vmatpush.msrb.mxu2 %v985_v32  ;;  %v2124_v32 = vld [vmem:[%s3401_s2 + $0x30] sm:$0xff] }
 0x32e   :  { %1017 = vmatmul.f32.vlgmr.msrb.gmra.mxu2 %v63_v2  ;;  %v2123_v2 = vld [vmem:[%s3401_s2 + $0x28] sm:$0xff] }
 0x336   :  { %1020 = vmatmul.f32.gmra.mxu2 %v64_v46  ;;  %v2125_v46 = vld [vmem:[%s3401_s2 + $0x38] sm:$0xff] }
 0x3b1   :  { %v1018_v16 = vpop.f32.mrf.mxu2 }
 0x3b2   :  { %v1024_v24 = vadd.f32 1e-20, %v1018_v16 }
 0x3b4   :  { %1028 = vrot.lane.b32.xlu2 %v1024_v24, %s2134_s23  ;;  %v2126_v24 = vld [vmem:[%s3401_s2 + $0x40] sm:$0xff] }
 0x3b9   :  { %v1021_v0 = vpop.f32.mrf.mxu2 }
 0x3ba   :  { %v1025_v1 = vadd.f32 1e-20, %v1021_v0 }
 0x3bc   :  { %1030 = vrot.lane.b32.xlu0 %v1025_v1, %s2134_s23  ;;  %v2128_v1 = vld [vmem:[%s3401_s2 + $0x50] sm:$0xff] }
 0x40e   :  { %v1029_v60 = vpop.permute.xlu2 %1028 }
 0x40f   :  { %2114 = vrcp.f32 %v1029_v60  ;;  %v1045_v22 = vand.u32 2147483648, %v1029_v60  ;;  %v1043_v45 = vand.u32 2147483647, %v1029_v60  ;;  %vm1039_vm9 = vweird.f32 %v1029_v60 }
 0x411   :  { %v1046_v61 = vor.u32 1.1754944e-38, %v1045_v22  ;;  %vm1044_vm6 = vcmp.eq.f32.partialorder %v1043_v45, 8.507059e+37  ;;  %v2131_v22 = vld [vmem:[%s3401_s2 + $0x68] sm:$0xff]  ;;  %v1405_v45 = vld [vmem:[%s3403_s10] sm:$0xff] }
 0x415   :  { %v2115_v55 = vpop.eup %2114 }
 0x416   :  { %v1035_v57 = vmul.f32 %v2115_v55, %v1029_v60  ;;  %vm1040_vm7 = vweird.f32 %v2115_v55  ;;  %v2129_v60 = vld [vmem:[%s3401_s2 + $0x58] sm:$0xff] }
 0x417   :  { %vm1041_vm10 = vmor %vm1039_vm9, %vm1040_vm7 }
 0x418   :  { %v1036_v51 = vsub.f32 1.0, %v1035_v57  ;;  %v2130_v57 = vld [vmem:[%s3401_s2 + $0x60] sm:$0xff] }
 0x41a   :  { %v1037_v6 = vmul.f32 %v2115_v55, %v1036_v51  ;;  %v1193_v51 = vpop.f32.mrf.mxu3 }
 0x41c   :  { %v1038_v42 = vadd.f32 %v2115_v55, %v1037_v6  ;;  %v1406_v6 = vld [vmem:[%s3403_s10 + $0x8] sm:$0xff] }
 0x41e   :  { %v1042_v17 = vsel %vm1041_vm10, %v2115_v55, %v1038_v42  ;;  %v1407_v55 = vld [vmem:[%s3403_s10 + $0x10] sm:$0xff] }
 0x41f   :  { %v1047_v30 = vsel %vm1044_vm6, %v1046_v61, %v1042_v17  ;;  %v2132_v61 = vld [vmem:[%s3401_s2 + $0x70] sm:$0xff] }
 0x420   :  { %v1048_v47 = vmul.f32 %v1047_v30, %v1018_v16  ;;  %v1408_v16 = vld [vmem:[%s3403_s10 + $0x18] sm:$0xff] }
 0x421   :  { %1473 = vmatpush.msra.mxu0 %v1408_v16  ;;  %v2133_v30 = vld [vmem:[%s3401_s2 + $0x78] sm:$0xff]  ;;  %v3452_v16 = vld [vmem:[#allocation2_spill] sm:$0xff] }
 0x422   :  { %1066 = vrot.lane.b32.xlu1 %v1048_v47, %s2135_s18  ;;  %v1196_v42 = vpop.f32.mrf.mxu3  ;;  %v3178_v47 = vld [vmem:[%s3400_s7 + $0x1] ss:$0 sm:$0xff] }
 0x423   :  { %1474 = vmatpush.msra.mxu0 %v1407_v55 }
 0x425   :  { %1475 = vmatpush.msra.mxu0 %v1406_v6 }
 0x427   :  { %1476 = vmatpush.msra.mxu0 %v1405_v45 }
 0x42a   :  { %v1199_v17 = vpop.f32.mrf.mxu3 }
 0x42b   :  { %v1200_v29 = vadd.f32 %v3178_v47, %v1199_v17 }
 0x42e   :  { %v1031_v11 = vpop.permute.xlu0 %1030 }
 0x42f   :  { %2116 = vrcp.f32 %v1031_v11  ;;  %v1060_v58 = vand.u32 2147483648, %v1031_v11  ;;  %vm1054_vm11 = vweird.f32 %v1031_v11  ;;  %v1058_v15 = vand.u32 2147483647, %v1031_v11 }
 0x431   :  { %v1061_v48 = vor.u32 1.1754944e-38, %v1060_v58  ;;  %vm1059_vm13 = vcmp.eq.f32.partialorder %v1058_v15, 8.507059e+37 }
 0x435   :  { %v2117_v37 = vpop.eup %2116 }
 0x436   :  { %v1050_v44 = vmul.f32 %v2117_v37, %v1031_v11  ;;  %vm1055_vm12 = vweird.f32 %v2117_v37  ;;  %v1202_v11 = vpop.f32.mrf.mxu3 }
 0x437   :  { %vm1056_vm4 = vmor %vm1054_vm11, %vm1055_vm12 }
 0x438   :  { %v1051_v14 = vsub.f32 1.0, %v1050_v44 }
 0x43a   :  { %v1052_v56 = vmul.f32 %v2117_v37, %v1051_v14 }
 0x43c   :  { %v1053_v54 = vadd.f32 %v2117_v37, %v1052_v56 }
 0x43e   :  { %v1057_v27 = vsel %vm1056_vm4, %v2117_v37, %v1053_v54  ;;  %v1194_v37 = vadd.f32 %v3178_v47, %v1193_v51  ;;  %v1205_v56 = vpop.f32.mrf.mxu3 }
 0x43f   :  { %v1062_v4 = vsel %vm1059_vm13, %v1061_v48, %v1057_v27  ;;  %v1197_v48 = vadd.f32 %v3178_v47, %v1196_v42 }
 0x440   :  { %v1063_v35 = vmul.f32 %v1062_v4, %v1021_v0  ;;  %v2127_v0 = vld [vmem:[%s3401_s2 + $0x48] sm:$0xff] }
 0x442   :  { %1068 = vrot.lane.b32.xlu2 %v1063_v35, %s2135_s18 }
 0x446   :  { %v1208_v41 = vpop.f32.mrf.mxu3 }
 0x494   :  { %v1067_v50 = vpop.permute.xlu1 %1066 }
 0x495   :  { %v1072_v43 = vadd.f32 %v1067_v50, %v2276_v20 }
 0x497   :  { %v1074_v62 = vmax.f32 %v1072_v43, 0.0 }
 0x499   :  { %1078 = vrot.lane.b32.xlu0 %v1074_v62, %s2134_s23  ;;  %v1203_v62 = vadd.f32 %v3178_v47, %v1202_v11 }
 0x49c   :  { %v1069_v33 = vpop.permute.xlu2 %1068 }
 0x49d   :  { %v1073_v53 = vadd.f32 %v1069_v33, %v2268_v18  ;;  %v2046_v18 = vld [vmem:[%s3396_s9 + $0x1] ss:$0 sm:$0xff] }
 0x49f   :  { %v1075_v23 = vmax.f32 %v1073_v53, 0.0 }
 0x4a1   :  { %1080 = vrot.lane.b32.xlu1 %v1075_v23, %s2134_s23  ;;  %v1211_v23 = vpop.f32.mrf.mxu3 }
 0x50b   :  { %v1079_v38 = vpop.permute.xlu0 %1078 }
 0x50c   :  { %v1084_v28 = vadd.f32 %v1079_v38, %v2234_v7  ;;  %v1206_v38 = vadd.f32 %v3178_v47, %v1205_v56 }
 0x50e   :  { %1924 = vmatmul.msk.f32.vlgmr.msrb.gmra.mxu1 %vm245_vm2, %v1084_v28 }
 0x513   :  { %v1081_v20 = vpop.permute.xlu1 %1080 }
 0x514   :  { %v1085_v52 = vadd.f32 %v1081_v20, %v2238_v8  ;;  %v2118_v8 = vld [vmem:[%s3401_s2] sm:$0xff] }
 0x516   :  { %1925 = vmatmul.msk.f32.gmra.mxu1 %vm245_vm2, %v1085_v52 }
 0x58b   :  { %v1274_v36 = vpop.f32.mrf.mxu1 }
 0x58c   :  { %v1275_v26 = vadd.f32 %v2046_v18, %v1274_v36  ;;  %v1209_v36 = vadd.f32 %v3178_v47, %v1208_v41  ;;  %v1967_v41 = vld [vmem:[%s3403_s10 + $0x38] sm:$0xff] }
 0x58d   :  { %1612 = vmatpush.msra.mxu1 %v1967_v41 }
 0x58e   :  { %1284 = vrot.lane.b32.xlu0 %v1275_v26, %s2134_s23 }
 0x593   :  { %v1277_v63 = vpop.f32.mrf.mxu1 }
 0x594   :  { %v1278_v12 = vadd.f32 %v2046_v18, %v1277_v63  ;;  %v1214_v18 = vpop.f32.mrf.mxu3 }
 0x596   :  { %1286 = vrot.lane.b32.xlu2 %v1278_v12, %s2134_s23 }
 0x5f0   :  { %v1287_v7 = vpop.permute.xlu2 %1286 }
 0x5f1   :  { %1927 = vmatpush.msk.msra.mxu2 %vm2347_vm5, %v1287_v7 }
 0x600   :  { %v1285_v21 = vpop.permute.xlu0 %1284 }
 0x601   :  { %1929 = vmatpush.msk.msra.mxu2 %vm2347_vm5, %v1285_v21  ;;  %v1212_v21 = vadd.f32 %v3178_v47, %v1211_v23 }
 0x603   :  { %1930 = vmatpush.msk.msra.mxu2 %vm245_vm2, %v1278_v12 }
 0x605   :  { %1931 = vmatpush.msk.msra.mxu2 %vm245_vm2, %v1275_v26 }
 0x606   :  { %1932 = vmatmul.msk.f32.vlgmr.msra.gmra.mxu2 %vm245_vm2, %v2118_v8 }
 0x60e   :  { %1933 = vmatmul.msk.f32.gmra.mxu2 %vm245_vm2, %v2119_v5 }
 0x616   :  { %1934 = vmatmul.msk.f32.gmra.mxu2 %vm245_vm2, %v2120_v39 }
 0x61e   :  { %1935 = vmatmul.msk.f32.gmra.mxu2 %vm245_vm2, %v2121_v13 }
 0x626   :  { %1936 = vmatmul.msk.f32.gmra.mxu2 %vm245_vm2, %v2122_v34 }
 0x62e   :  { %1937 = vmatmul.msk.f32.gmra.mxu2 %vm245_vm2, %v2123_v2 }
 0x636   :  { %1938 = vmatmul.msk.f32.gmra.mxu2 %vm245_vm2, %v2124_v32 }
 0x63e   :  { %1939 = vmatmul.msk.f32.gmra.mxu2 %vm245_vm2, %v2125_v46 }
 0x646   :  { %1940 = vmatmul.msk.f32.gmra.mxu2 %vm245_vm2, %v2126_v24 }
 0x64e   :  { %1941 = vmatmul.msk.f32.gmra.mxu2 %vm245_vm2, %v2127_v0 }
 0x656   :  { %1942 = vmatmul.msk.f32.gmra.mxu2 %vm245_vm2, %v2128_v1 }
 0x65e   :  { %1943 = vmatmul.msk.f32.gmra.mxu2 %vm245_vm2, %v2129_v60 }
 0x666   :  { %1944 = vmatmul.msk.f32.gmra.mxu2 %vm245_vm2, %v2130_v57  ;;  %v3453_v57 = vld [vmem:[#allocation3_spill] sm:$0xff] }
 0x66e   :  { %1945 = vmatmul.msk.f32.gmra.mxu2 %vm245_vm2, %v2131_v22 }
 0x676   :  { %1946 = vmatmul.msk.f32.gmra.mxu2 %vm245_vm2, %v2132_v61  ;;  %v3454_v61 = vld [vmem:[#allocation4_spill] sm:$0xff] }
 0x67e   :  { %1947 = vmatmul.msk.f32.gmra.mxu2 %vm245_vm2, %v2133_v30 }
 0x689   :  { %v1309_v44 = vpop.f32.mrf.mxu2 }
 0x68a   :  { %v1357_v58 = vadd.f32 %v1309_v44, %v1194_v37 }
 0x68c   :  { %v1373_v14 = vmax.f32 %v1357_v58, 0.0  ;;  %v3455_v58 = vld [vmem:[#allocation5_spill] sm:$0xff] }
 0x68e   :  { %v1389_v15 = vadd.f32 %v1373_v14, %v2499_v25 }
 0x690   :  { %1948 = vmatmul.msk.f32.vlgmr.msra.gmra.mxu0 %vm245_vm2, %v1389_v15 }
 0x691   :  { %v1312_v54 = vpop.f32.mrf.mxu2 }
 0x692   :  { %v1358_v27 = vadd.f32 %v1312_v54, %v1197_v48 }
 0x694   :  { %v1374_v4 = vmax.f32 %v1358_v27, 0.0 }
 0x696   :  { %v1390_v35 = vadd.f32 %v1374_v4, %v2511_v31  ;;  %v3456_v4 = vld [vmem:[#allocation6_spill] sm:$0xff] }
 0x698   :  { %1949 = vmatmul.msk.f32.gmra.mxu0 %vm245_vm2, %v1390_v35 }
 0x699   :  { %v1315_v9 = vpop.f32.mrf.mxu2 }
 0x69a   :  { %v1359_v50 = vadd.f32 %v1315_v9, %v1200_v29 }
 0x69c   :  { %v1375_v43 = vmax.f32 %v1359_v50, 0.0 }
 0x69e   :  { %v1391_v25 = vadd.f32 %v1375_v43, %v2523_v40 }
 0x6a0   :  { %1950 = vmatmul.msk.f32.gmra.mxu0 %vm245_vm2, %v1391_v25 }
 0x6a1   :  { %v1318_v33 = vpop.f32.mrf.mxu2 }
 0x6a2   :  { %v1360_v53 = vadd.f32 %v1318_v33, %v1203_v62  ;;  %v3457_v62 = vld [vmem:[#allocation7_spill] sm:$0xff] }
 0x6a4   :  { %v1376_v19 = vmax.f32 %v1360_v53, 0.0  ;;  %v1966_v53 = vld [vmem:[%s3403_s10 + $0x30] sm:$0xff] }
 0x6a5   :  { %1613 = vmatpush.msra.mxu1 %v1966_v53 }
 0x6a6   :  { %v1392_v31 = vadd.f32 %v1376_v19, %v2535_v49  ;;  %v1217_v49 = vpop.f32.mrf.mxu3  ;;  %v1965_v19 = vld [vmem:[%s3403_s10 + $0x28] sm:$0xff] }
 0x6a7   :  { %v1218_v24 = vadd.f32 %v3178_v47, %v1217_v49  ;;  %1614 = vmatpush.msra.mxu1 %v1965_v19  ;;  %v3459_v49 = vld [vmem:[#allocation9_spill] sm:$0xff]  ;;  %v1681_v19 = vld [vmem:[%s3405_s12] sm:$0xff] }
 0x6a8   :  { %1951 = vmatmul.msk.f32.gmra.mxu0 %vm245_vm2, %v1392_v31  ;;  %v1964_v31 = vld [vmem:[%s3403_s10 + $0x20] sm:$0xff] }
 0x6a9   :  { %v1321_v28 = vpop.f32.mrf.mxu2  ;;  %1615 = vmatpush.msra.mxu1 %v1964_v31 }
 0x6aa   :  { %v1361_v20 = vadd.f32 %v1321_v28, %v1206_v38 }
 0x6ac   :  { %v1377_v52 = vmax.f32 %v1361_v20, 0.0 }
 0x6ae   :  { %v1393_v40 = vadd.f32 %v1377_v52, %v2547_v59  ;;  %v1215_v59 = vadd.f32 %v3178_v47, %v1214_v18  ;;  %v1220_v34 = vpop.f32.mrf.mxu3  ;;  %v3458_v18 = vld [vmem:[#allocation8_spill] sm:$0xff] }
 0x6af   :  { %v1221_v51 = vadd.f32 %v3178_v47, %v1220_v34 }
 0x6b0   :  { %1952 = vmatmul.msk.f32.gmra.mxu0 %vm245_vm2, %v1393_v40 }
 0x6b1   :  { %v1324_v26 = vpop.f32.mrf.mxu2 }
 0x6b2   :  { %v1362_v63 = vadd.f32 %v1324_v26, %v1209_v36 }
 0x6b4   :  { %v1378_v12 = vmax.f32 %v1362_v63, 0.0 }
 0x6b6   :  { %v1394_v7 = vadd.f32 %v1378_v12, %v2559_v3  ;;  %v1223_v60 = vpop.f32.mrf.mxu3 }
 0x6b7   :  { %v1224_v30 = vadd.f32 %v3178_v47, %v1223_v60 }
 0x6b8   :  { %1953 = vmatmul.msk.f32.gmra.mxu0 %vm245_vm2, %v1394_v7 }
 0x6b9   :  { %v1327_v8 = vpop.f32.mrf.mxu2 }
 0x6ba   :  { %v1363_v5 = vadd.f32 %v1327_v8, %v1212_v21 }
 0x6bc   :  { %v1379_v39 = vmax.f32 %v1363_v5, 0.0 }
 0x6be   :  { %v1395_v13 = vadd.f32 %v1379_v39, %v2571_v10  ;;  %v1226_v42 = vpop.f32.mrf.mxu3 }
 0x6bf   :  { %v1227_v56 = vadd.f32 %v3178_v47, %v1226_v42 }
 0x6c0   :  { %1954 = vmatmul.msk.f32.gmra.mxu0 %vm245_vm2, %v1395_v13 }
 0x6c1   :  { %v1330_v2 = vpop.f32.mrf.mxu2 }
 0x6c2   :  { %v1364_v32 = vadd.f32 %v1330_v2, %v1215_v59  ;;  %v3460_v59 = vld [vmem:[#allocation10_spill] sm:$0xff] }
 0x6c3   :  { %v3243_v2 = vld [vmem:[%s3404_s11] ss:$0 sm:$0xff] }
 0x6c4   :  { %v1380_v46 = vmax.f32 %v1364_v32, 0.0 }
 0x6c6   :  { %v1396_v3 = vadd.f32 %v1380_v46, %v3452_v16  ;;  %v1229_v15 = vpop.f32.mrf.mxu3 }
 0x6c7   :  { %v1230_v29 = vadd.f32 %v3178_v47, %v1229_v15 }
 0x6c8   :  { %1955 = vmatmul.msk.f32.gmra.mxu0 %vm245_vm2, %v1396_v3 }
 0x6c9   :  { %v1333_v0 = vpop.f32.mrf.mxu2 }
 0x6ca   :  { %v1365_v1 = vadd.f32 %v1333_v0, %v1218_v24 }
 0x6cc   :  { %v1381_v55 = vmax.f32 %v1365_v1, 0.0 }
 0x6ce   :  { %v1397_v10 = vadd.f32 %v1381_v55, %v3453_v57  ;;  %v1232_v9 = vpop.f32.mrf.mxu3 }
 0x6cf   :  { %v1233_v23 = vadd.f32 %v3178_v47, %v1232_v9 }
 0x6d0   :  { %1956 = vmatmul.msk.f32.gmra.mxu0 %vm245_vm2, %v1397_v10 }
 0x6d1   :  { %v1336_v22 = vpop.f32.mrf.mxu2 }
 0x6d2   :  { %v1366_v6 = vadd.f32 %v1336_v22, %v1221_v51 }
 0x6d4   :  { %v1382_v45 = vmax.f32 %v1366_v6, 0.0 }
 0x6d6   :  { %v1398_v17 = vadd.f32 %v1382_v45, %v3454_v61  ;;  %v1235_v20 = vpop.f32.mrf.mxu3 }
 0x6d7   :  { %v1236_v36 = vadd.f32 %v3178_v47, %v1235_v20 }
 0x6d8   :  { %1957 = vmatmul.msk.f32.gmra.mxu0 %vm245_vm2, %v1398_v17 }
 0x6d9   :  { %v1339_v11 = vpop.f32.mrf.mxu2 }
 0x6da   :  { %v1367_v37 = vadd.f32 %v1339_v11, %v1224_v30 }
 0x6dc   :  { %v1383_v44 = vmax.f32 %v1367_v37, 0.0 }
 0x6de   :  { %v1399_v14 = vadd.f32 %v1383_v44, %v3455_v58  ;;  %v1238_v7 = vpop.f32.mrf.mxu3 }
 0x6df   :  { %v1239_v8 = vadd.f32 %v3178_v47, %v1238_v7 }
 0x6e0   :  { %1958 = vmatmul.msk.f32.gmra.mxu0 %vm245_vm2, %v1399_v14  ;;  %v1684_v14 = vld [vmem:[%s3405_s12 + $0x18] sm:$0xff] }
 0x6e1   :  { %v1342_v48 = vpop.f32.mrf.mxu2  ;;  %1749 = vmatpush.msra.mxu3 %v1684_v14 }
 0x6e2   :  { %v1368_v54 = vadd.f32 %v1342_v48, %v1227_v56 }
 0x6e4   :  { %v1384_v27 = vmax.f32 %v1368_v54, 0.0 }
 0x6e6   :  { %v1400_v35 = vadd.f32 %v1384_v27, %v3456_v4 }
 0x6e8   :  { %1959 = vmatmul.msk.f32.gmra.mxu0 %vm245_vm2, %v1400_v35 }
 0x6e9   :  { %v1345_v50 = vpop.f32.mrf.mxu2 }
 0x6ea   :  { %v1369_v43 = vadd.f32 %v1345_v50, %v1230_v29 }
 0x6ec   :  { %v1385_v25 = vmax.f32 %v1369_v43, 0.0 }
 0x6ee   :  { %v1401_v33 = vadd.f32 %v1385_v25, %v3457_v62  ;;  %v1683_v25 = vld [vmem:[%s3405_s12 + $0x10] sm:$0xff] }
 0x6ef   :  { %1750 = vmatpush.msra.mxu3 %v1683_v25  ;;  %v2049_v25 = vld [vmem:[%s3406_s13] ss:$0 sm:$0xff] }
 0x6f0   :  { %1960 = vmatmul.msk.f32.gmra.mxu0 %vm245_vm2, %v1401_v33 }
 0x6f1   :  { %v1348_v38 = vpop.f32.mrf.mxu2 }
 0x6f2   :  { %v1370_v28 = vadd.f32 %v1348_v38, %v1233_v23  ;;  %v1682_v23 = vld [vmem:[%s3405_s12 + $0x8] sm:$0xff] }
 0x6f3   :  { %1751 = vmatpush.msra.mxu3 %v1682_v23 }
 0x6f4   :  { %v1386_v52 = vmax.f32 %v1370_v28, 0.0 }
 0x6f5   :  { %1752 = vmatpush.msra.mxu3 %v1681_v19 }
 0x6f6   :  { %v1402_v40 = vadd.f32 %v1386_v52, %v3458_v18 }
 0x6f8   :  { %1961 = vmatmul.msk.f32.gmra.mxu0 %vm245_vm2, %v1402_v40 }
 0x6f9   :  { %v1351_v26 = vpop.f32.mrf.mxu2 }
 0x6fa   :  { %v1371_v63 = vadd.f32 %v1351_v26, %v1236_v36 }
 0x6fc   :  { %v1387_v12 = vmax.f32 %v1371_v63, 0.0  ;;  %v3292_v63 = vld [vmem:[%s3404_s11 + $0x1] ss:$0 sm:$0xff] }
 0x6fe   :  { %v1403_v21 = vadd.f32 %v1387_v12, %v3459_v49 }
 0x700   :  { %1962 = vmatmul.msk.f32.gmra.mxu0 %vm245_vm2, %v1403_v21 }
 0x701   :  { %v1354_v5 = vpop.f32.mrf.mxu2 }
 0x702   :  { %v1372_v39 = vadd.f32 %v1354_v5, %v1239_v8 }
 0x704   :  { %v1388_v13 = vmax.f32 %v1372_v39, 0.0 }
 0x706   :  { %v1404_v34 = vadd.f32 %v1388_v13, %v3460_v59 }
 0x708   :  { %1963 = vmatmul.msk.f32.gmra.mxu0 %vm245_vm2, %v1404_v34 }
 0x70d   :  { %v1478_v32 = vpop.f32.mrf.mxu0 }
 0x70e   :  { %v1479_v46 = vadd.f32 %v3243_v2, %v1478_v32 }
 0x710   :  { %v1526_v16 = vmax.f32 %v1479_v46, 0.0 }
 0x712   :  { %1969 = vmatmul.msk.f32.vlgmr.msra.gmra.mxu1 %vm245_vm2, %v1526_v16 }
 0x715   :  { %v1481_v47 = vpop.f32.mrf.mxu0 }
 0x716   :  { %v1482_v3 = vadd.f32 %v3243_v2, %v1481_v47 }
 0x718   :  { %v1527_v24 = vmax.f32 %v1482_v3, 0.0 }
 0x71a   :  { %1970 = vmatmul.msk.f32.gmra.mxu1 %vm245_vm2, %v1527_v24 }
 0x71d   :  { %v1484_v0 = vpop.f32.mrf.mxu0 }
 0x71e   :  { %v1485_v1 = vadd.f32 %v3243_v2, %v1484_v0 }
 0x720   :  { %v1528_v60 = vmax.f32 %v1485_v1, 0.0 }
 0x722   :  { %1971 = vmatmul.msk.f32.gmra.mxu1 %vm245_vm2, %v1528_v60 }
 0x725   :  { %v1487_v55 = vpop.f32.mrf.mxu0 }
 0x726   :  { %v1488_v57 = vadd.f32 %v3243_v2, %v1487_v55 }
 0x728   :  { %v1529_v10 = vmax.f32 %v1488_v57, 0.0 }
 0x72a   :  { %1972 = vmatmul.msk.f32.gmra.mxu1 %vm245_vm2, %v1529_v10 }
 0x72d   :  { %v1490_v51 = vpop.f32.mrf.mxu0 }
 0x72e   :  { %v1491_v22 = vadd.f32 %v3243_v2, %v1490_v51 }
 0x730   :  { %v1530_v6 = vmax.f32 %v1491_v22, 0.0 }
 0x732   :  { %1973 = vmatmul.msk.f32.gmra.mxu1 %vm245_vm2, %v1530_v6 }
 0x735   :  { %v1493_v45 = vpop.f32.mrf.mxu0 }
 0x736   :  { %v1494_v42 = vadd.f32 %v3243_v2, %v1493_v45 }
 0x738   :  { %v1531_v61 = vmax.f32 %v1494_v42, 0.0 }
 0x73a   :  { %1974 = vmatmul.msk.f32.gmra.mxu1 %vm245_vm2, %v1531_v61 }
 0x73d   :  { %v1496_v17 = vpop.f32.mrf.mxu0 }
 0x73e   :  { %v1497_v30 = vadd.f32 %v3243_v2, %v1496_v17 }
 0x740   :  { %v1532_v11 = vmax.f32 %v1497_v30, 0.0 }
 0x742   :  { %1975 = vmatmul.msk.f32.gmra.mxu1 %vm245_vm2, %v1532_v11 }
 0x745   :  { %v1499_v37 = vpop.f32.mrf.mxu0 }
 0x746   :  { %v1500_v44 = vadd.f32 %v3243_v2, %v1499_v37 }
 0x748   :  { %v1533_v58 = vmax.f32 %v1500_v44, 0.0 }
 0x74a   :  { %1976 = vmatmul.msk.f32.gmra.mxu1 %vm245_vm2, %v1533_v58 }
 0x74d   :  { %v1502_v15 = vpop.f32.mrf.mxu0 }
 0x74e   :  { %v1503_v56 = vadd.f32 %v3243_v2, %v1502_v15 }
 0x750   :  { %v1534_v48 = vmax.f32 %v1503_v56, 0.0 }
 0x752   :  { %1977 = vmatmul.msk.f32.gmra.mxu1 %vm245_vm2, %v1534_v48 }
 0x755   :  { %v1505_v54 = vpop.f32.mrf.mxu0 }
 0x756   :  { %v1506_v27 = vadd.f32 %v3243_v2, %v1505_v54 }
 0x758   :  { %v1535_v4 = vmax.f32 %v1506_v27, 0.0 }
 0x75a   :  { %1978 = vmatmul.msk.f32.gmra.mxu1 %vm245_vm2, %v1535_v4 }
 0x75d   :  { %v1508_v35 = vpop.f32.mrf.mxu0 }
 0x75e   :  { %v1509_v29 = vadd.f32 %v3243_v2, %v1508_v35 }
 0x760   :  { %v1536_v41 = vmax.f32 %v1509_v29, 0.0 }
 0x762   :  { %1979 = vmatmul.msk.f32.gmra.mxu1 %vm245_vm2, %v1536_v41 }
 0x765   :  { %v1511_v9 = vpop.f32.mrf.mxu0 }
 0x766   :  { %v1512_v50 = vadd.f32 %v3243_v2, %v1511_v9 }
 0x768   :  { %v1537_v43 = vmax.f32 %v1512_v50, 0.0 }
 0x76a   :  { %1980 = vmatmul.msk.f32.gmra.mxu1 %vm245_vm2, %v1537_v43 }
 0x76d   :  { %v1514_v62 = vpop.f32.mrf.mxu0 }
 0x76e   :  { %v1515_v33 = vadd.f32 %v3243_v2, %v1514_v62 }
 0x770   :  { %v1538_v53 = vmax.f32 %v1515_v33, 0.0 }
 0x772   :  { %1981 = vmatmul.msk.f32.gmra.mxu1 %vm245_vm2, %v1538_v53 }
 0x775   :  { %v1517_v31 = vpop.f32.mrf.mxu0 }
 0x776   :  { %v1518_v38 = vadd.f32 %v3243_v2, %v1517_v31 }
 0x778   :  { %v1539_v28 = vmax.f32 %v1518_v38, 0.0 }
 0x77a   :  { %1982 = vmatmul.msk.f32.gmra.mxu1 %vm245_vm2, %v1539_v28 }
 0x77d   :  { %v1520_v20 = vpop.f32.mrf.mxu0 }
 0x77e   :  { %v1521_v52 = vadd.f32 %v3243_v2, %v1520_v20 }
 0x780   :  { %v1540_v18 = vmax.f32 %v1521_v52, 0.0 }
 0x782   :  { %1983 = vmatmul.msk.f32.gmra.mxu1 %vm245_vm2, %v1540_v18 }
 0x785   :  { %v1523_v40 = vpop.f32.mrf.mxu0 }
 0x786   :  { %v1524_v36 = vadd.f32 %v3243_v2, %v1523_v40 }
 0x788   :  { %v1541_v26 = vmax.f32 %v1524_v36, 0.0 }
 0x78a   :  { %1984 = vmatmul.msk.f32.gmra.mxu1 %vm245_vm2, %v1541_v26 }
 0x78f   :  { %v1617_v12 = vpop.f32.mrf.mxu1 }
 0x790   :  { %v1618_v7 = vadd.f32 %v3292_v63, %v1617_v12 }
 0x792   :  { %v1665_v49 = vmax.f32 %v1618_v7, 0.0 }
 0x794   :  { %1985 = vmatmul.msk.f32.vlgmr.msra.gmra.mxu3 %vm245_vm2, %v1665_v49 }
 0x797   :  { %v1620_v21 = vpop.f32.mrf.mxu1 }
 0x798   :  { %v1621_v8 = vadd.f32 %v3292_v63, %v1620_v21 }
 0x79a   :  { %v1666_v5 = vmax.f32 %v1621_v8, 0.0 }
 0x79c   :  { %1986 = vmatmul.msk.f32.gmra.mxu3 %vm245_vm2, %v1666_v5 }
 0x79f   :  { %v1623_v39 = vpop.f32.mrf.mxu1 }
 0x7a0   :  { %v1624_v13 = vadd.f32 %v3292_v63, %v1623_v39 }
 0x7a2   :  { %v1667_v59 = vmax.f32 %v1624_v13, 0.0 }
 0x7a4   :  { %1987 = vmatmul.msk.f32.gmra.mxu3 %vm245_vm2, %v1667_v59 }
 0x7a7   :  { %v1626_v34 = vpop.f32.mrf.mxu1 }
 0x7a8   :  { %v1627_v2 = vadd.f32 %v3292_v63, %v1626_v34 }
 0x7aa   :  { %v1668_v32 = vmax.f32 %v1627_v2, 0.0 }
 0x7ac   :  { %1988 = vmatmul.msk.f32.gmra.mxu3 %vm245_vm2, %v1668_v32 }
 0x7af   :  { %v1629_v46 = vpop.f32.mrf.mxu1 }
 0x7b0   :  { %v1630_v16 = vadd.f32 %v3292_v63, %v1629_v46 }
 0x7b2   :  { %v1669_v47 = vmax.f32 %v1630_v16, 0.0 }
 0x7b4   :  { %1989 = vmatmul.msk.f32.gmra.mxu3 %vm245_vm2, %v1669_v47 }
 0x7b7   :  { %v1632_v3 = vpop.f32.mrf.mxu1 }
 0x7b8   :  { %v1633_v24 = vadd.f32 %v3292_v63, %v1632_v3 }
 0x7ba   :  { %v1670_v0 = vmax.f32 %v1633_v24, 0.0 }
 0x7bc   :  { %1990 = vmatmul.msk.f32.gmra.mxu3 %vm245_vm2, %v1670_v0 }
 0x7bf   :  { %v1635_v1 = vpop.f32.mrf.mxu1 }
 0x7c0   :  { %v1636_v60 = vadd.f32 %v3292_v63, %v1635_v1 }
 0x7c2   :  { %v1671_v55 = vmax.f32 %v1636_v60, 0.0 }
 0x7c4   :  { %1991 = vmatmul.msk.f32.gmra.mxu3 %vm245_vm2, %v1671_v55 }
 0x7c7   :  { %v1638_v57 = vpop.f32.mrf.mxu1 }
 0x7c8   :  { %v1639_v10 = vadd.f32 %v3292_v63, %v1638_v57 }
 0x7ca   :  { %v1672_v51 = vmax.f32 %v1639_v10, 0.0 }
 0x7cc   :  { %1992 = vmatmul.msk.f32.gmra.mxu3 %vm245_vm2, %v1672_v51 }
 0x7cf   :  { %v1641_v22 = vpop.f32.mrf.mxu1 }
 0x7d0   :  { %v1642_v6 = vadd.f32 %v3292_v63, %v1641_v22 }
 0x7d2   :  { %v1673_v45 = vmax.f32 %v1642_v6, 0.0 }
 0x7d4   :  { %1993 = vmatmul.msk.f32.gmra.mxu3 %vm245_vm2, %v1673_v45 }
 0x7d7   :  { %v1644_v42 = vpop.f32.mrf.mxu1 }
 0x7d8   :  { %v1645_v61 = vadd.f32 %v3292_v63, %v1644_v42 }
 0x7da   :  { %v1674_v17 = vmax.f32 %v1645_v61, 0.0 }
 0x7dc   :  { %1994 = vmatmul.msk.f32.gmra.mxu3 %vm245_vm2, %v1674_v17 }
 0x7df   :  { %v1647_v30 = vpop.f32.mrf.mxu1 }
 0x7e0   :  { %v1648_v11 = vadd.f32 %v3292_v63, %v1647_v30 }
 0x7e2   :  { %v1675_v37 = vmax.f32 %v1648_v11, 0.0 }
 0x7e4   :  { %1995 = vmatmul.msk.f32.gmra.mxu3 %vm245_vm2, %v1675_v37 }
 0x7e7   :  { %v1650_v44 = vpop.f32.mrf.mxu1 }
 0x7e8   :  { %v1651_v58 = vadd.f32 %v3292_v63, %v1650_v44 }
 0x7ea   :  { %v1676_v14 = vmax.f32 %v1651_v58, 0.0 }
 0x7ec   :  { %1996 = vmatmul.msk.f32.gmra.mxu3 %vm245_vm2, %v1676_v14 }
 0x7ef   :  { %v1653_v15 = vpop.f32.mrf.mxu1 }
 0x7f0   :  { %v1654_v56 = vadd.f32 %v3292_v63, %v1653_v15 }
 0x7f2   :  { %v1677_v48 = vmax.f32 %v1654_v56, 0.0 }
 0x7f4   :  { %1997 = vmatmul.msk.f32.gmra.mxu3 %vm245_vm2, %v1677_v48 }
 0x7f7   :  { %v1656_v54 = vpop.f32.mrf.mxu1 }
 0x7f8   :  { %v1657_v27 = vadd.f32 %v3292_v63, %v1656_v54 }
 0x7fa   :  { %v1678_v4 = vmax.f32 %v1657_v27, 0.0 }
 0x7fc   :  { %1998 = vmatmul.msk.f32.gmra.mxu3 %vm245_vm2, %v1678_v4 }
 0x7ff   :  { %v1659_v35 = vpop.f32.mrf.mxu1 }
 0x800   :  { %v1660_v29 = vadd.f32 %v3292_v63, %v1659_v35 }
 0x802   :  { %v1679_v41 = vmax.f32 %v1660_v29, 0.0 }
 0x804   :  { %1999 = vmatmul.msk.f32.gmra.mxu3 %vm245_vm2, %v1679_v41 }
 0x807   :  { %v1662_v9 = vpop.f32.mrf.mxu1 }
 0x808   :  { %v1663_v50 = vadd.f32 %v3292_v63, %v1662_v9 }
 0x80a   :  { %v1680_v43 = vmax.f32 %v1663_v50, 0.0 }
 0x80c   :  { %2000 = vmatmul.msk.f32.gmra.mxu3 %vm245_vm2, %v1680_v43 }
 0x817   :  { %v1754_v62 = vpop.f32.mrf.mxu3 }
 0x818   :  { %v1755_v33 = vadd.f32 %v2049_v25, %v1754_v62 }
 0x81a   :  { %1802 = vst.msk [vmem:[%s3407_s14] sm:$0xff] %vm68_vm1, %v1755_v33 }
 0x81f   :  { %v1757_v53 = vpop.f32.mrf.mxu3 }
 0x820   :  { %v1758_v23 = vadd.f32 %v2049_v25, %v1757_v53 }
 0x822   :  { %1803 = vst.msk [vmem:[%s3407_s14 + $0x8] sm:$0xff] %vm68_vm1, %v1758_v23 }
 0x827   :  { %v1760_v19 = vpop.f32.mrf.mxu3 }
 0x828   :  { %v1761_v31 = vadd.f32 %v2049_v25, %v1760_v19 }
 0x82a   :  { %1804 = vst.msk [vmem:[%s3407_s14 + $0x10] sm:$0xff] %vm68_vm1, %v1761_v31 }
 0x82f   :  { %v1763_v38 = vpop.f32.mrf.mxu3 }
 0x830   :  { %v1764_v28 = vadd.f32 %v2049_v25, %v1763_v38 }
 0x832   :  { %1805 = vst.msk [vmem:[%s3407_s14 + $0x18] sm:$0xff] %vm68_vm1, %v1764_v28 }
 0x837   :  { %v1766_v20 = vpop.f32.mrf.mxu3 }
 0x838   :  { %v1767_v52 = vadd.f32 %v2049_v25, %v1766_v20 }
 0x83a   :  { %1806 = vst.msk [vmem:[%s3407_s14 + $0x20] sm:$0xff] %vm68_vm1, %v1767_v52 }
 0x83f   :  { %v1769_v18 = vpop.f32.mrf.mxu3 }
 0x840   :  { %v1770_v40 = vadd.f32 %v2049_v25, %v1769_v18 }
 0x842   :  { %1807 = vst.msk [vmem:[%s3407_s14 + $0x28] sm:$0xff] %vm68_vm1, %v1770_v40 }
 0x847   :  { %v1772_v36 = vpop.f32.mrf.mxu3 }
 0x848   :  { %v1773_v26 = vadd.f32 %v2049_v25, %v1772_v36 }
 0x84a   :  { %1808 = vst.msk [vmem:[%s3407_s14 + $0x30] sm:$0xff] %vm68_vm1, %v1773_v26 }
 0x84f   :  { %v1775_v63 = vpop.f32.mrf.mxu3 }
 0x850   :  { %v1776_v12 = vadd.f32 %v2049_v25, %v1775_v63 }
 0x852   :  { %1809 = vst.msk [vmem:[%s3407_s14 + $0x38] sm:$0xff] %vm68_vm1, %v1776_v12 }
 0x857   :  { %v1778_v7 = vpop.f32.mrf.mxu3 }
 0x858   :  { %v1779_v49 = vadd.f32 %v2049_v25, %v1778_v7 }
 0x85a   :  { %1810 = vst.msk [vmem:[%s3407_s14 + $0x40] sm:$0xff] %vm68_vm1, %v1779_v49 }
 0x85f   :  { %v1781_v21 = vpop.f32.mrf.mxu3 }
 0x860   :  { %v1782_v8 = vadd.f32 %v2049_v25, %v1781_v21 }
 0x862   :  { %1811 = vst.msk [vmem:[%s3407_s14 + $0x48] sm:$0xff] %vm68_vm1, %v1782_v8 }
 0x867   :  { %v1784_v5 = vpop.f32.mrf.mxu3 }
 0x868   :  { %v1785_v39 = vadd.f32 %v2049_v25, %v1784_v5 }
 0x86a   :  { %1812 = vst.msk [vmem:[%s3407_s14 + $0x50] sm:$0xff] %vm68_vm1, %v1785_v39 }
 0x86f   :  { %v1787_v13 = vpop.f32.mrf.mxu3 }
 0x870   :  { %v1788_v59 = vadd.f32 %v2049_v25, %v1787_v13 }
 0x872   :  { %1813 = vst.msk [vmem:[%s3407_s14 + $0x58] sm:$0xff] %vm68_vm1, %v1788_v59 }
 0x877   :  { %v1790_v34 = vpop.f32.mrf.mxu3 }
 0x878   :  { %v1791_v2 = vadd.f32 %v2049_v25, %v1790_v34 }
 0x87a   :  { %1814 = vst.msk [vmem:[%s3407_s14 + $0x60] sm:$0xff] %vm68_vm1, %v1791_v2 }
 0x87f   :  { %v1793_v32 = vpop.f32.mrf.mxu3 }
 0x880   :  { %v1794_v46 = vadd.f32 %v2049_v25, %v1793_v32 }
 0x882   :  { %1815 = vst.msk [vmem:[%s3407_s14 + $0x68] sm:$0xff] %vm68_vm1, %v1794_v46 }
 0x887   :  { %v1796_v16 = vpop.f32.mrf.mxu3 }
 0x888   :  { %v1797_v47 = vadd.f32 %v2049_v25, %v1796_v16 }
 0x88a   :  { %1816 = vst.msk [vmem:[%s3407_s14 + $0x70] sm:$0xff] %vm68_vm1, %v1797_v47 }
 0x88f   :  { %v1799_v3 = vpop.f32.mrf.mxu3 }
 0x890   :  { %v1800_v24 = vadd.f32 %v2049_v25, %v1799_v3 }
 0x892   :  { %1817 = vst.msk [vmem:[%s3407_s14 + $0x78] sm:$0xff] %vm68_vm1, %v1800_v24 }

</bundles_post_ra>
